<compile_context>
chip_gen: v6e
topology: v6e:2x2x1
jax: 0.10.0
libtpu: 0.0.40
codegen_flags: <defaults>
</compile_context>

<pallas_src>
import functools

import jax
import jax.numpy as jnp
from jax.experimental import pallas as pl
from jax.experimental.pallas import tpu as pltpu


def set_conv_kernel(x_ref, w1x_ref, w1f_ref, b1_ref, w2_ref, b2_ref,
                    w3_ref, b3_ref, w4_ref, b4_ref, out_ref, *, K):
    """One (batch, npoint-tile) grid step.

    x_ref : (K, Cin, Nt)  f32   nsample outer, channels sublane, npoint lane
    w1x   : (Cout, 3)           BN-folded weight for the raw xyz channels
    w1f   : (Cout, Cin)         BN/PointNorm-folded weight for normalized features
    w2-w4 : (Cout, Cout)        BN-folded 1x1-conv weights
    b*    : (Cout, 1)   f32     folded biases
    out   : (Cout, Nt)
    """
    cdt = w2_ref.dtype                            # matmul compute dtype (bf16 or f32)
    x = x_ref[...]                                # (K, Cin, Nt) f32

    # ---- PointNorm (alpha/beta + eval-BN folded into w1/b1 by the wrapper) ----
    d = x - x[0:1]                                # anchor = neighbour 0 of each group
    mu = jnp.mean(d, axis=1, keepdims=True)       # channel stats: sublane reduce (XLU)
    cm = d - mu
    var = jnp.mean(cm * cm, axis=1, keepdims=True)  # two-pass variance (no cancellation)
    inv = pl.reciprocal(jnp.sqrt(var) + 1e-6, approx=True)   # EUP, matches std+eps form
    feat = (d * inv).astype(cdt)                  # (K, Cin, Nt) normalized features
    xyz = x[:, :3, :].astype(cdt)                 # raw xyz channels (pre-norm copy)

    w1x = w1x_ref[...]; w1f = w1f_ref[...]
    w2 = w2_ref[...]; w3 = w3_ref[...]; w4 = w4_ref[...]
    b1 = b1_ref[...]; b2 = b2_ref[...]; b3 = b3_ref[...]; b4 = b4_ref[...]

    def mm(w, a):                                 # (Co,Ci)@(Ci,Nt) -> (Co,Nt) f32
        return jax.lax.dot_general(w, a, (((1,), (0,)), ((), ())),
                                   preferred_element_type=jnp.float32)

    # Per-k MLP chain with on-the-fly max pooling: nothing wider than (Cout, Nt)
    # is ever live, and y_k dies immediately after the w3 matmul.
    pooled_y = None
    pooled_z = None
    for k in range(K):                            # static unroll over nsample
        # self.conv : Conv1x1 -> BN -> ReLU -> Conv1x1 -> BN        (BN folded)
        h = jnp.maximum(mm(w1x, xyz[k]) + mm(w1f, feat[k]) + b1, 0.0)
        y = mm(w2, h.astype(cdt)) + b2                              # (Cout, Nt)
        pooled_y = y if pooled_y is None else jnp.maximum(pooled_y, y)
        # self.conv1: Conv1x1 -> BN -> ReLU -> Conv1x1 -> BN -> maxpool
        h1 = jnp.maximum(mm(w3, y.astype(cdt)) + b3, 0.0)
        z = mm(w4, h1.astype(cdt)) + b4
        pooled_z = z if pooled_z is None else jnp.maximum(pooled_z, z)

    out_ref[...] = jnp.maximum(pooled_y + pooled_z, 0.0).astype(out_ref.dtype)


def _vmem_budget_bytes():
    """~2/3 of this generation's per-core VMEM (v5e/v6e: 128 MiB, v7x: 64 MiB)."""
    try:
        cap = int(getattr(pltpu.get_tpu_info(), "vmem_capacity_bytes", 0)) or (64 << 20)
    except Exception:
        cap = 64 << 20                            # assume the smallest (v7x) if unknown
    return max(16 << 20, (2 * cap) // 3)


def _choose_n_tile(N, K, Cin, Cout, B, weight_bytes, budget):
    """Largest npoint tile that (a) keeps the output store lane-dense (n_tile % 128 == 0),
    (b) fits the per-generation VMEM budget, (c) keeps K*n_tile <= ~64K lanes, and
    (d) leaves >= 2 grid steps when B == 1 so both v7x TensorCores get work."""
    rup8 = lambda v: ((v + 7) // 8) * 8
    # rough f32 bytes per output lane per step:
    #   ~5x (double-buffered input tile + d/feat/bf16 copies) + ~8x Cout-wide live slabs
    per_lane = 4 * (5 * K * rup8(Cin) + 8 * rup8(Cout))
    cap = max(128, (budget - weight_bytes) // max(per_lane, 1))
    cap = min(cap, max(128, (64 * 1024) // max(K, 1)))          # m_tile <= ~64K lanes
    if B == 1:
        cap = min(cap, max(128, N // 2))
    if N % 128 == 0:
        cand = [d for d in range(128, N + 1, 128) if N % d == 0 and d <= cap]
        if cand:
            return max(cand)
    # Tiny / odd N: take the whole axis (block == full dim is always a legal shape).
    return N


def set_conv_forward(x_nchw, p, *, n_tile=None, matmul_dtype=jnp.bfloat16):
    """x_nchw: (B, Cin, npoint, nsample) like PyTorch.  Returns (B, Cout, npoint)."""
    B, Cin, N, K = x_nchw.shape
    assert Cin >= 3, "first 3 input channels must be xyz"
    Cout = p["w2"].shape[0]

    # One HBM transpose so the kernel sees (K, Cin, n_tile) tiles (K outer, N on lanes).
    x = jnp.transpose(x_nchw, (0, 3, 1, 2)).astype(jnp.float32)   # (B, K, Cin, N)

    # ---- fold eval-mode BN and PointNorm alpha/beta into the conv weights ----
    alpha, beta = p["pn_alpha"], p["pn_beta"]
    w1 = p["w1"]                                  # (Cout, 3+Cin), cols = [xyz | feat]
    w1x = w1[:, :3] * p["s1"][:, None]
    w1f = (w1[:, 3:] * alpha[None, :]) * p["s1"][:, None]
    b1 = p["b1"] + p["s1"] * (w1[:, 3:] @ beta)
    w2 = p["w2"] * p["s2"][:, None]
    w3 = p["w3"] * p["s3"][:, None]
    w4 = p["w4"] * p["s4"][:, None]

    wdt = matmul_dtype
    col = lambda v: v.reshape(-1, 1).astype(jnp.float32)
    consts = [w1x.astype(wdt), w1f.astype(wdt), col(b1),
              w2.astype(wdt), col(p["b2"]),
              w3.astype(wdt), col(p["b3"]),
              w4.astype(wdt), col(p["b4"])]
    weight_bytes = sum(int(a.size) * a.dtype.itemsize for a in consts)

    budget = _vmem_budget_bytes()
    if n_tile is None:
        n_tile = _choose_n_tile(N, K, Cin, Cout, B, weight_bytes, budget)
    assert N % n_tile == 0

    def const_spec(a):                            # weights: fixed block index -> resident
        nd = a.ndim
        return pl.BlockSpec(a.shape, lambda b, n, _nd=nd: (0,) * _nd)

    out = pl.pallas_call(
        functools.partial(set_conv_kernel, K=K),
        out_shape=jax.ShapeDtypeStruct((B, Cout, N), jnp.float32),
        grid=(B, N // n_tile),
        in_specs=[pl.BlockSpec((None, K, Cin, n_tile), lambda b, n: (b, 0, 0, n))]
                 + [const_spec(a) for a in consts],
        out_specs=pl.BlockSpec((None, Cout, n_tile), lambda b, n: (b, 0, n)),
        compiler_params=pltpu.CompilerParams(
            dimension_semantics=("parallel", "parallel"),
            vmem_limit_bytes=int(budget)),
    )(x, *consts)
    return out                                    # already (B, Cout, N)


def torch_style_reference(x, p):
    """Pure-JAX NCHW reference mirroring the PyTorch graph (BN in eval mode)."""
    xyz = x[:, :3]
    anchor = x[:, :, :, 0:1]
    d = x - anchor
    std = jnp.std(d, axis=1, keepdims=True)       # unbiased=False
    pts = d / (std + 1e-6)
    pts = pts * p["pn_alpha"].reshape(1, -1, 1, 1) + p["pn_beta"].reshape(1, -1, 1, 1)
    pts = jnp.concatenate([xyz, pts], axis=1)

    def conv1x1(h, w):
        return jnp.einsum("bcnk,oc->bonk", h, w)

    def bn(h, s, b):
        return h * s.reshape(1, -1, 1, 1) + b.reshape(1, -1, 1, 1)

    h = jax.nn.relu(bn(conv1x1(pts, p["w1"]), p["s1"], p["b1"]))
    y = bn(conv1x1(h, p["w2"]), p["s2"], p["b2"])
    h1 = jax.nn.relu(bn(conv1x1(y, p["w3"]), p["s3"], p["b3"]))
    z = bn(conv1x1(h1, p["w4"]), p["s4"], p["b4"])
    return jax.nn.relu(jnp.max(z, axis=-1) + jnp.max(y, axis=-1))


def make_params(key, in_channels, out_channels):
    ks = jax.random.split(key, 8)
    C1 = in_channels + 3

    def bn_fold(k, c):
        k1, k2, k3, k4 = jax.random.split(k, 4)
        gamma = jax.random.uniform(k1, (c,), minval=0.5, maxval=1.5)
        beta = 0.1 * jax.random.normal(k2, (c,))
        rmean = 0.1 * jax.random.normal(k3, (c,))
        rvar = jax.random.uniform(k4, (c,), minval=0.5, maxval=1.5)
        scale = gamma / jnp.sqrt(rvar + 1e-5)
        shift = beta - rmean * scale
        return scale.astype(jnp.float32), shift.astype(jnp.float32)

    p = {
        # PointNorm params exactly as in __init__: ones / zeros
        "pn_alpha": jnp.ones((in_channels,), jnp.float32),
        "pn_beta": jnp.zeros((in_channels,), jnp.float32),
        # Conv2d(kernel_size=1, bias=False) weights, stored as (Cout, Cin)
        "w1": 0.1 * jax.random.normal(ks[0], (out_channels, C1), jnp.float32),
        "w2": 0.1 * jax.random.normal(ks[1], (out_channels, out_channels), jnp.float32),
        "w3": 0.1 * jax.random.normal(ks[2], (out_channels, out_channels), jnp.float32),
        "w4": 0.1 * jax.random.normal(ks[3], (out_channels, out_channels), jnp.float32),
    }
    p["s1"], p["b1"] = bn_fold(ks[4], out_channels)
    p["s2"], p["b2"] = bn_fold(ks[5], out_channels)
    p["s3"], p["b3"] = bn_fold(ks[6], out_channels)
    p["s4"], p["b4"] = bn_fold(ks[7], out_channels)
    return p


if __name__ == "__main__":
    key = jax.random.PRNGKey(0)
    kx, kp, kx2 = jax.random.split(key, 3)

    Cin, K, Cout = 4, 8, 32
    params = make_params(kp, Cin, Cout)

    # Case 1: tiny module-like shapes (n_tile == N fallback path), f32 matmuls.
    B, N = 2, 16
    x = jax.random.normal(kx, (B, Cin, N, K), jnp.float32)       # PyTorch NCHW input
    out = jax.block_until_ready(set_conv_forward(x, params, matmul_dtype=jnp.float32))
    ref = jax.block_until_ready(torch_style_reference(x, params))
    assert out.shape == (B, Cout, N), out.shape
    err = float(jnp.max(jnp.abs(out - ref)))
    assert jnp.allclose(out, ref, rtol=5e-3, atol=5e-3), err

    # Case 2: larger npoint so the lane-dense (n_tile % 128 == 0) path is exercised,
    # bf16 MXU operands with f32 accumulation (looser tolerance).
    B2, N2 = 2, 512
    x2 = jax.random.normal(kx2, (B2, Cin, N2, K), jnp.float32)
    out2 = jax.block_until_ready(set_conv_forward(x2, params, matmul_dtype=jnp.bfloat16))
    ref2 = jax.block_until_ready(torch_style_reference(x2, params))
    assert out2.shape == (B2, Cout, N2), out2.shape
    err2 = float(jnp.max(jnp.abs(out2 - ref2)))
    assert jnp.allclose(out2, ref2, rtol=5e-2, atol=5e-2), err2

    print("KERNEL_OK")
</pallas_src>

<mosaic_0001>
module attributes {stable_mosaic.version = 11 : i64} {
  func.func @set_conv_kernel(%arg0: i32, %arg1: i32, %arg2: memref<1x8x4x16xf32, #tpu.memory_space<vmem>>, %arg3: memref<32x3xf32, #tpu.memory_space<vmem>>, %arg4: memref<32x4xf32, #tpu.memory_space<vmem>>, %arg5: memref<32x1xf32, #tpu.memory_space<vmem>>, %arg6: memref<32x32xf32, #tpu.memory_space<vmem>>, %arg7: memref<32x1xf32, #tpu.memory_space<vmem>>, %arg8: memref<32x32xf32, #tpu.memory_space<vmem>>, %arg9: memref<32x1xf32, #tpu.memory_space<vmem>>, %arg10: memref<32x32xf32, #tpu.memory_space<vmem>>, %arg11: memref<32x1xf32, #tpu.memory_space<vmem>>, %arg12: memref<1x32x16xf32, #tpu.memory_space<vmem>>) attributes {dimension_semantics = [#tpu.dimension_semantics<parallel>, #tpu.dimension_semantics<parallel>], iteration_bounds = array<i64: 2, 1>, scalar_prefetch = 0 : i64, scratch_operands = 0 : i64, tpu.core_type = #tpu.core_type<tc>, window_params = [{transform_indices = @transform_0, window_bounds = array<i64: 1, 8, 4, 16>}, {pipeline_mode = #tpu.pipeline_mode<synchronous>, transform_indices = @transform_1, window_bounds = array<i64: 32, 3>}, {pipeline_mode = #tpu.pipeline_mode<synchronous>, transform_indices = @transform_2, window_bounds = array<i64: 32, 4>}, {pipeline_mode = #tpu.pipeline_mode<synchronous>, transform_indices = @transform_3, window_bounds = array<i64: 32, 1>}, {pipeline_mode = #tpu.pipeline_mode<synchronous>, transform_indices = @transform_4, window_bounds = array<i64: 32, 32>}, {pipeline_mode = #tpu.pipeline_mode<synchronous>, transform_indices = @transform_5, window_bounds = array<i64: 32, 1>}, {pipeline_mode = #tpu.pipeline_mode<synchronous>, transform_indices = @transform_6, window_bounds = array<i64: 32, 32>}, {pipeline_mode = #tpu.pipeline_mode<synchronous>, transform_indices = @transform_7, window_bounds = array<i64: 32, 1>}, {pipeline_mode = #tpu.pipeline_mode<synchronous>, transform_indices = @transform_8, window_bounds = array<i64: 32, 32>}, {pipeline_mode = #tpu.pipeline_mode<synchronous>, transform_indices = @transform_9, window_bounds = array<i64: 32, 1>}, {transform_indices = @transform_10, window_bounds = array<i64: 1, 32, 16>}]} {
    %c0 = arith.constant 0 : index
    %c0_0 = arith.constant 0 : index
    %c0_1 = arith.constant 0 : index
    %c0_2 = arith.constant 0 : index
    %0 = vector.load %arg2[%c0, %c0_0, %c0_1, %c0_2] : memref<1x8x4x16xf32, #tpu.memory_space<vmem>>, vector<1x8x4x16xf32>
    %1 = vector.shape_cast %0 : vector<1x8x4x16xf32> to vector<8x4x16xf32>
    %2 = vector.extract_strided_slice %1 {offsets = [0, 0, 0], sizes = [1, 4, 16], strides = [1, 1, 1]} : vector<8x4x16xf32> to vector<1x4x16xf32>
    %3 = vector.broadcast %2 : vector<1x4x16xf32> to vector<8x4x16xf32>
    %4 = arith.subf %1, %3 : vector<8x4x16xf32>
    %cst = arith.constant dense<0.000000e+00> : vector<8x16xf32>
    %5 = vector.multi_reduction <add>, %4, %cst [1] : vector<8x4x16xf32> to vector<8x16xf32>
    %6 = vector.shape_cast %5 : vector<8x16xf32> to vector<8x1x16xf32>
    %cst_3 = arith.constant 4.000000e+00 : f32
    %7 = vector.broadcast %cst_3 : f32 to vector<8x1x16xf32>
    %8 = arith.divf %6, %7 : vector<8x1x16xf32>
    %9 = vector.broadcast %8 : vector<8x1x16xf32> to vector<8x4x16xf32>
    %10 = arith.subf %4, %9 : vector<8x4x16xf32>
    %11 = arith.mulf %10, %10 : vector<8x4x16xf32>
    %cst_4 = arith.constant dense<0.000000e+00> : vector<8x16xf32>
    %12 = vector.multi_reduction <add>, %11, %cst_4 [1] : vector<8x4x16xf32> to vector<8x16xf32>
    %13 = vector.shape_cast %12 : vector<8x16xf32> to vector<8x1x16xf32>
    %cst_5 = arith.constant 4.000000e+00 : f32
    %14 = vector.broadcast %cst_5 : f32 to vector<8x1x16xf32>
    %15 = arith.divf %13, %14 : vector<8x1x16xf32>
    %16 = math.sqrt %15 : vector<8x1x16xf32>
    %cst_6 = arith.constant 9.99999997E-7 : f32
    %17 = vector.broadcast %cst_6 : f32 to vector<8x1x16xf32>
    %18 = arith.addf %16, %17 : vector<8x1x16xf32>
    %19 = tpu.reciprocal %18 {approx = true} : vector<8x1x16xf32> -> vector<8x1x16xf32>
    %20 = vector.broadcast %19 : vector<8x1x16xf32> to vector<8x4x16xf32>
    %21 = arith.mulf %4, %20 : vector<8x4x16xf32>
    %22 = vector.extract_strided_slice %1 {offsets = [0, 0, 0], sizes = [8, 3, 16], strides = [1, 1, 1]} : vector<8x4x16xf32> to vector<8x3x16xf32>
    %c0_7 = arith.constant 0 : index
    %c0_8 = arith.constant 0 : index
    %23 = vector.load %arg3[%c0_7, %c0_8] : memref<32x3xf32, #tpu.memory_space<vmem>>, vector<32x3xf32>
    %c0_9 = arith.constant 0 : index
    %c0_10 = arith.constant 0 : index
    %24 = vector.load %arg4[%c0_9, %c0_10] : memref<32x4xf32, #tpu.memory_space<vmem>>, vector<32x4xf32>
    %c0_11 = arith.constant 0 : index
    %c0_12 = arith.constant 0 : index
    %25 = vector.load %arg6[%c0_11, %c0_12] : memref<32x32xf32, #tpu.memory_space<vmem>>, vector<32x32xf32>
    %c0_13 = arith.constant 0 : index
    %c0_14 = arith.constant 0 : index
    %26 = vector.load %arg8[%c0_13, %c0_14] : memref<32x32xf32, #tpu.memory_space<vmem>>, vector<32x32xf32>
    %c0_15 = arith.constant 0 : index
    %c0_16 = arith.constant 0 : index
    %27 = vector.load %arg10[%c0_15, %c0_16] : memref<32x32xf32, #tpu.memory_space<vmem>>, vector<32x32xf32>
    %c0_17 = arith.constant 0 : index
    %c0_18 = arith.constant 0 : index
    %28 = vector.load %arg5[%c0_17, %c0_18] : memref<32x1xf32, #tpu.memory_space<vmem>>, vector<32x1xf32>
    %c0_19 = arith.constant 0 : index
    %c0_20 = arith.constant 0 : index
    %29 = vector.load %arg7[%c0_19, %c0_20] : memref<32x1xf32, #tpu.memory_space<vmem>>, vector<32x1xf32>
    %c0_21 = arith.constant 0 : index
    %c0_22 = arith.constant 0 : index
    %30 = vector.load %arg9[%c0_21, %c0_22] : memref<32x1xf32, #tpu.memory_space<vmem>>, vector<32x1xf32>
    %c0_23 = arith.constant 0 : index
    %c0_24 = arith.constant 0 : index
    %31 = vector.load %arg11[%c0_23, %c0_24] : memref<32x1xf32, #tpu.memory_space<vmem>>, vector<32x1xf32>
    %32 = vector.extract_strided_slice %22 {offsets = [0, 0, 0], sizes = [1, 3, 16], strides = [1, 1, 1]} : vector<8x3x16xf32> to vector<1x3x16xf32>
    %33 = vector.shape_cast %32 : vector<1x3x16xf32> to vector<3x16xf32>
    %cst_25 = arith.constant dense<0.000000e+00> : vector<32x16xf32>
    %34 = tpu.matmul %23, %33, %cst_25 {dimension_numbers = #tpu.dot_dimension_numbers<[1], [0], [0], [1], [0, 0, 1, 1], [], []>} : vector<32x3xf32>, vector<3x16xf32>, vector<32x16xf32> -> vector<32x16xf32>
    %35 = vector.extract_strided_slice %21 {offsets = [0, 0, 0], sizes = [1, 4, 16], strides = [1, 1, 1]} : vector<8x4x16xf32> to vector<1x4x16xf32>
    %36 = vector.shape_cast %35 : vector<1x4x16xf32> to vector<4x16xf32>
    %cst_26 = arith.constant dense<0.000000e+00> : vector<32x16xf32>
    %37 = tpu.matmul %24, %36, %cst_26 {dimension_numbers = #tpu.dot_dimension_numbers<[1], [0], [0], [1], [0, 0, 1, 1], [], []>} : vector<32x4xf32>, vector<4x16xf32>, vector<32x16xf32> -> vector<32x16xf32>
    %38 = arith.addf %34, %37 : vector<32x16xf32>
    %39 = vector.broadcast %28 : vector<32x1xf32> to vector<32x16xf32>
    %40 = arith.addf %38, %39 : vector<32x16xf32>
    %cst_27 = arith.constant 0.000000e+00 : f32
    %41 = vector.broadcast %cst_27 : f32 to vector<32x16xf32>
    %42 = arith.maximumf %40, %41 : vector<32x16xf32>
    %cst_28 = arith.constant dense<0.000000e+00> : vector<32x16xf32>
    %43 = tpu.matmul %25, %42, %cst_28 {dimension_numbers = #tpu.dot_dimension_numbers<[1], [0], [0], [1], [0, 0, 1, 1], [], []>} : vector<32x32xf32>, vector<32x16xf32>, vector<32x16xf32> -> vector<32x16xf32>
    %44 = vector.broadcast %29 : vector<32x1xf32> to vector<32x16xf32>
    %45 = arith.addf %43, %44 : vector<32x16xf32>
    %cst_29 = arith.constant dense<0.000000e+00> : vector<32x16xf32>
    %46 = tpu.matmul %26, %45, %cst_29 {dimension_numbers = #tpu.dot_dimension_numbers<[1], [0], [0], [1], [0, 0, 1, 1], [], []>} : vector<32x32xf32>, vector<32x16xf32>, vector<32x16xf32> -> vector<32x16xf32>
    %47 = vector.broadcast %30 : vector<32x1xf32> to vector<32x16xf32>
    %48 = arith.addf %46, %47 : vector<32x16xf32>
    %cst_30 = arith.constant 0.000000e+00 : f32
    %49 = vector.broadcast %cst_30 : f32 to vector<32x16xf32>
    %50 = arith.maximumf %48, %49 : vector<32x16xf32>
    %cst_31 = arith.constant dense<0.000000e+00> : vector<32x16xf32>
    %51 = tpu.matmul %27, %50, %cst_31 {dimension_numbers = #tpu.dot_dimension_numbers<[1], [0], [0], [1], [0, 0, 1, 1], [], []>} : vector<32x32xf32>, vector<32x16xf32>, vector<32x16xf32> -> vector<32x16xf32>
    %52 = vector.broadcast %31 : vector<32x1xf32> to vector<32x16xf32>
    %53 = arith.addf %51, %52 : vector<32x16xf32>
    %54 = vector.extract_strided_slice %22 {offsets = [1, 0, 0], sizes = [1, 3, 16], strides = [1, 1, 1]} : vector<8x3x16xf32> to vector<1x3x16xf32>
    %55 = vector.shape_cast %54 : vector<1x3x16xf32> to vector<3x16xf32>
    %cst_32 = arith.constant dense<0.000000e+00> : vector<32x16xf32>
    %56 = tpu.matmul %23, %55, %cst_32 {dimension_numbers = #tpu.dot_dimension_numbers<[1], [0], [0], [1], [0, 0, 1, 1], [], []>} : vector<32x3xf32>, vector<3x16xf32>, vector<32x16xf32> -> vector<32x16xf32>
    %57 = vector.extract_strided_slice %21 {offsets = [1, 0, 0], sizes = [1, 4, 16], strides = [1, 1, 1]} : vector<8x4x16xf32> to vector<1x4x16xf32>
    %58 = vector.shape_cast %57 : vector<1x4x16xf32> to vector<4x16xf32>
    %cst_33 = arith.constant dense<0.000000e+00> : vector<32x16xf32>
    %59 = tpu.matmul %24, %58, %cst_33 {dimension_numbers = #tpu.dot_dimension_numbers<[1], [0], [0], [1], [0, 0, 1, 1], [], []>} : vector<32x4xf32>, vector<4x16xf32>, vector<32x16xf32> -> vector<32x16xf32>
    %60 = arith.addf %56, %59 : vector<32x16xf32>
    %61 = vector.broadcast %28 : vector<32x1xf32> to vector<32x16xf32>
    %62 = arith.addf %60, %61 : vector<32x16xf32>
    %cst_34 = arith.constant 0.000000e+00 : f32
    %63 = vector.broadcast %cst_34 : f32 to vector<32x16xf32>
    %64 = arith.maximumf %62, %63 : vector<32x16xf32>
    %cst_35 = arith.constant dense<0.000000e+00> : vector<32x16xf32>
    %65 = tpu.matmul %25, %64, %cst_35 {dimension_numbers = #tpu.dot_dimension_numbers<[1], [0], [0], [1], [0, 0, 1, 1], [], []>} : vector<32x32xf32>, vector<32x16xf32>, vector<32x16xf32> -> vector<32x16xf32>
    %66 = vector.broadcast %29 : vector<32x1xf32> to vector<32x16xf32>
    %67 = arith.addf %65, %66 : vector<32x16xf32>
    %68 = arith.maximumf %45, %67 : vector<32x16xf32>
    %cst_36 = arith.constant dense<0.000000e+00> : vector<32x16xf32>
    %69 = tpu.matmul %26, %67, %cst_36 {dimension_numbers = #tpu.dot_dimension_numbers<[1], [0], [0], [1], [0, 0, 1, 1], [], []>} : vector<32x32xf32>, vector<32x16xf32>, vector<32x16xf32> -> vector<32x16xf32>
    %70 = vector.broadcast %30 : vector<32x1xf32> to vector<32x16xf32>
    %71 = arith.addf %69, %70 : vector<32x16xf32>
    %cst_37 = arith.constant 0.000000e+00 : f32
    %72 = vector.broadcast %cst_37 : f32 to vector<32x16xf32>
    %73 = arith.maximumf %71, %72 : vector<32x16xf32>
    %cst_38 = arith.constant dense<0.000000e+00> : vector<32x16xf32>
    %74 = tpu.matmul %27, %73, %cst_38 {dimension_numbers = #tpu.dot_dimension_numbers<[1], [0], [0], [1], [0, 0, 1, 1], [], []>} : vector<32x32xf32>, vector<32x16xf32>, vector<32x16xf32> -> vector<32x16xf32>
    %75 = vector.broadcast %31 : vector<32x1xf32> to vector<32x16xf32>
    %76 = arith.addf %74, %75 : vector<32x16xf32>
    %77 = arith.maximumf %53, %76 : vector<32x16xf32>
    %78 = vector.extract_strided_slice %22 {offsets = [2, 0, 0], sizes = [1, 3, 16], strides = [1, 1, 1]} : vector<8x3x16xf32> to vector<1x3x16xf32>
    %79 = vector.shape_cast %78 : vector<1x3x16xf32> to vector<3x16xf32>
    %cst_39 = arith.constant dense<0.000000e+00> : vector<32x16xf32>
    %80 = tpu.matmul %23, %79, %cst_39 {dimension_numbers = #tpu.dot_dimension_numbers<[1], [0], [0], [1], [0, 0, 1, 1], [], []>} : vector<32x3xf32>, vector<3x16xf32>, vector<32x16xf32> -> vector<32x16xf32>
    %81 = vector.extract_strided_slice %21 {offsets = [2, 0, 0], sizes = [1, 4, 16], strides = [1, 1, 1]} : vector<8x4x16xf32> to vector<1x4x16xf32>
    %82 = vector.shape_cast %81 : vector<1x4x16xf32> to vector<4x16xf32>
    %cst_40 = arith.constant dense<0.000000e+00> : vector<32x16xf32>
    %83 = tpu.matmul %24, %82, %cst_40 {dimension_numbers = #tpu.dot_dimension_numbers<[1], [0], [0], [1], [0, 0, 1, 1], [], []>} : vector<32x4xf32>, vector<4x16xf32>, vector<32x16xf32> -> vector<32x16xf32>
    %84 = arith.addf %80, %83 : vector<32x16xf32>
    %85 = vector.broadcast %28 : vector<32x1xf32> to vector<32x16xf32>
    %86 = arith.addf %84, %85 : vector<32x16xf32>
    %cst_41 = arith.constant 0.000000e+00 : f32
    %87 = vector.broadcast %cst_41 : f32 to vector<32x16xf32>
    %88 = arith.maximumf %86, %87 : vector<32x16xf32>
    %cst_42 = arith.constant dense<0.000000e+00> : vector<32x16xf32>
    %89 = tpu.matmul %25, %88, %cst_42 {dimension_numbers = #tpu.dot_dimension_numbers<[1], [0], [0], [1], [0, 0, 1, 1], [], []>} : vector<32x32xf32>, vector<32x16xf32>, vector<32x16xf32> -> vector<32x16xf32>
    %90 = vector.broadcast %29 : vector<32x1xf32> to vector<32x16xf32>
    %91 = arith.addf %89, %90 : vector<32x16xf32>
    %92 = arith.maximumf %68, %91 : vector<32x16xf32>
    %cst_43 = arith.constant dense<0.000000e+00> : vector<32x16xf32>
    %93 = tpu.matmul %26, %91, %cst_43 {dimension_numbers = #tpu.dot_dimension_numbers<[1], [0], [0], [1], [0, 0, 1, 1], [], []>} : vector<32x32xf32>, vector<32x16xf32>, vector<32x16xf32> -> vector<32x16xf32>
    %94 = vector.broadcast %30 : vector<32x1xf32> to vector<32x16xf32>
    %95 = arith.addf %93, %94 : vector<32x16xf32>
    %cst_44 = arith.constant 0.000000e+00 : f32
    %96 = vector.broadcast %cst_44 : f32 to vector<32x16xf32>
    %97 = arith.maximumf %95, %96 : vector<32x16xf32>
    %cst_45 = arith.constant dense<0.000000e+00> : vector<32x16xf32>
    %98 = tpu.matmul %27, %97, %cst_45 {dimension_numbers = #tpu.dot_dimension_numbers<[1], [0], [0], [1], [0, 0, 1, 1], [], []>} : vector<32x32xf32>, vector<32x16xf32>, vector<32x16xf32> -> vector<32x16xf32>
    %99 = vector.broadcast %31 : vector<32x1xf32> to vector<32x16xf32>
    %100 = arith.addf %98, %99 : vector<32x16xf32>
    %101 = arith.maximumf %77, %100 : vector<32x16xf32>
    %102 = vector.extract_strided_slice %22 {offsets = [3, 0, 0], sizes = [1, 3, 16], strides = [1, 1, 1]} : vector<8x3x16xf32> to vector<1x3x16xf32>
    %103 = vector.shape_cast %102 : vector<1x3x16xf32> to vector<3x16xf32>
    %cst_46 = arith.constant dense<0.000000e+00> : vector<32x16xf32>
    %104 = tpu.matmul %23, %103, %cst_46 {dimension_numbers = #tpu.dot_dimension_numbers<[1], [0], [0], [1], [0, 0, 1, 1], [], []>} : vector<32x3xf32>, vector<3x16xf32>, vector<32x16xf32> -> vector<32x16xf32>
    %105 = vector.extract_strided_slice %21 {offsets = [3, 0, 0], sizes = [1, 4, 16], strides = [1, 1, 1]} : vector<8x4x16xf32> to vector<1x4x16xf32>
    %106 = vector.shape_cast %105 : vector<1x4x16xf32> to vector<4x16xf32>
    %cst_47 = arith.constant dense<0.000000e+00> : vector<32x16xf32>
    %107 = tpu.matmul %24, %106, %cst_47 {dimension_numbers = #tpu.dot_dimension_numbers<[1], [0], [0], [1], [0, 0, 1, 1], [], []>} : vector<32x4xf32>, vector<4x16xf32>, vector<32x16xf32> -> vector<32x16xf32>
    %108 = arith.addf %104, %107 : vector<32x16xf32>
    %109 = vector.broadcast %28 : vector<32x1xf32> to vector<32x16xf32>
    %110 = arith.addf %108, %109 : vector<32x16xf32>
    %cst_48 = arith.constant 0.000000e+00 : f32
    %111 = vector.broadcast %cst_48 : f32 to vector<32x16xf32>
    %112 = arith.maximumf %110, %111 : vector<32x16xf32>
    %cst_49 = arith.constant dense<0.000000e+00> : vector<32x16xf32>
    %113 = tpu.matmul %25, %112, %cst_49 {dimension_numbers = #tpu.dot_dimension_numbers<[1], [0], [0], [1], [0, 0, 1, 1], [], []>} : vector<32x32xf32>, vector<32x16xf32>, vector<32x16xf32> -> vector<32x16xf32>
    %114 = vector.broadcast %29 : vector<32x1xf32> to vector<32x16xf32>
    %115 = arith.addf %113, %114 : vector<32x16xf32>
    %116 = arith.maximumf %92, %115 : vector<32x16xf32>
    %cst_50 = arith.constant dense<0.000000e+00> : vector<32x16xf32>
    %117 = tpu.matmul %26, %115, %cst_50 {dimension_numbers = #tpu.dot_dimension_numbers<[1], [0], [0], [1], [0, 0, 1, 1], [], []>} : vector<32x32xf32>, vector<32x16xf32>, vector<32x16xf32> -> vector<32x16xf32>
    %118 = vector.broadcast %30 : vector<32x1xf32> to vector<32x16xf32>
    %119 = arith.addf %117, %118 : vector<32x16xf32>
    %cst_51 = arith.constant 0.000000e+00 : f32
    %120 = vector.broadcast %cst_51 : f32 to vector<32x16xf32>
    %121 = arith.maximumf %119, %120 : vector<32x16xf32>
    %cst_52 = arith.constant dense<0.000000e+00> : vector<32x16xf32>
    %122 = tpu.matmul %27, %121, %cst_52 {dimension_numbers = #tpu.dot_dimension_numbers<[1], [0], [0], [1], [0, 0, 1, 1], [], []>} : vector<32x32xf32>, vector<32x16xf32>, vector<32x16xf32> -> vector<32x16xf32>
    %123 = vector.broadcast %31 : vector<32x1xf32> to vector<32x16xf32>
    %124 = arith.addf %122, %123 : vector<32x16xf32>
    %125 = arith.maximumf %101, %124 : vector<32x16xf32>
    %126 = vector.extract_strided_slice %22 {offsets = [4, 0, 0], sizes = [1, 3, 16], strides = [1, 1, 1]} : vector<8x3x16xf32> to vector<1x3x16xf32>
    %127 = vector.shape_cast %126 : vector<1x3x16xf32> to vector<3x16xf32>
    %cst_53 = arith.constant dense<0.000000e+00> : vector<32x16xf32>
    %128 = tpu.matmul %23, %127, %cst_53 {dimension_numbers = #tpu.dot_dimension_numbers<[1], [0], [0], [1], [0, 0, 1, 1], [], []>} : vector<32x3xf32>, vector<3x16xf32>, vector<32x16xf32> -> vector<32x16xf32>
    %129 = vector.extract_strided_slice %21 {offsets = [4, 0, 0], sizes = [1, 4, 16], strides = [1, 1, 1]} : vector<8x4x16xf32> to vector<1x4x16xf32>
    %130 = vector.shape_cast %129 : vector<1x4x16xf32> to vector<4x16xf32>
    %cst_54 = arith.constant dense<0.000000e+00> : vector<32x16xf32>
    %131 = tpu.matmul %24, %130, %cst_54 {dimension_numbers = #tpu.dot_dimension_numbers<[1], [0], [0], [1], [0, 0, 1, 1], [], []>} : vector<32x4xf32>, vector<4x16xf32>, vector<32x16xf32> -> vector<32x16xf32>
    %132 = arith.addf %128, %131 : vector<32x16xf32>
    %133 = vector.broadcast %28 : vector<32x1xf32> to vector<32x16xf32>
    %134 = arith.addf %132, %133 : vector<32x16xf32>
    %cst_55 = arith.constant 0.000000e+00 : f32
    %135 = vector.broadcast %cst_55 : f32 to vector<32x16xf32>
    %136 = arith.maximumf %134, %135 : vector<32x16xf32>
    %cst_56 = arith.constant dense<0.000000e+00> : vector<32x16xf32>
    %137 = tpu.matmul %25, %136, %cst_56 {dimension_numbers = #tpu.dot_dimension_numbers<[1], [0], [0], [1], [0, 0, 1, 1], [], []>} : vector<32x32xf32>, vector<32x16xf32>, vector<32x16xf32> -> vector<32x16xf32>
    %138 = vector.broadcast %29 : vector<32x1xf32> to vector<32x16xf32>
    %139 = arith.addf %137, %138 : vector<32x16xf32>
    %140 = arith.maximumf %116, %139 : vector<32x16xf32>
    %cst_57 = arith.constant dense<0.000000e+00> : vector<32x16xf32>
    %141 = tpu.matmul %26, %139, %cst_57 {dimension_numbers = #tpu.dot_dimension_numbers<[1], [0], [0], [1], [0, 0, 1, 1], [], []>} : vector<32x32xf32>, vector<32x16xf32>, vector<32x16xf32> -> vector<32x16xf32>
    %142 = vector.broadcast %30 : vector<32x1xf32> to vector<32x16xf32>
    %143 = arith.addf %141, %142 : vector<32x16xf32>
    %cst_58 = arith.constant 0.000000e+00 : f32
    %144 = vector.broadcast %cst_58 : f32 to vector<32x16xf32>
    %145 = arith.maximumf %143, %144 : vector<32x16xf32>
    %cst_59 = arith.constant dense<0.000000e+00> : vector<32x16xf32>
    %146 = tpu.matmul %27, %145, %cst_59 {dimension_numbers = #tpu.dot_dimension_numbers<[1], [0], [0], [1], [0, 0, 1, 1], [], []>} : vector<32x32xf32>, vector<32x16xf32>, vector<32x16xf32> -> vector<32x16xf32>
    %147 = vector.broadcast %31 : vector<32x1xf32> to vector<32x16xf32>
    %148 = arith.addf %146, %147 : vector<32x16xf32>
    %149 = arith.maximumf %125, %148 : vector<32x16xf32>
    %150 = vector.extract_strided_slice %22 {offsets = [5, 0, 0], sizes = [1, 3, 16], strides = [1, 1, 1]} : vector<8x3x16xf32> to vector<1x3x16xf32>
    %151 = vector.shape_cast %150 : vector<1x3x16xf32> to vector<3x16xf32>
    %cst_60 = arith.constant dense<0.000000e+00> : vector<32x16xf32>
    %152 = tpu.matmul %23, %151, %cst_60 {dimension_numbers = #tpu.dot_dimension_numbers<[1], [0], [0], [1], [0, 0, 1, 1], [], []>} : vector<32x3xf32>, vector<3x16xf32>, vector<32x16xf32> -> vector<32x16xf32>
    %153 = vector.extract_strided_slice %21 {offsets = [5, 0, 0], sizes = [1, 4, 16], strides = [1, 1, 1]} : vector<8x4x16xf32> to vector<1x4x16xf32>
    %154 = vector.shape_cast %153 : vector<1x4x16xf32> to vector<4x16xf32>
    %cst_61 = arith.constant dense<0.000000e+00> : vector<32x16xf32>
    %155 = tpu.matmul %24, %154, %cst_61 {dimension_numbers = #tpu.dot_dimension_numbers<[1], [0], [0], [1], [0, 0, 1, 1], [], []>} : vector<32x4xf32>, vector<4x16xf32>, vector<32x16xf32> -> vector<32x16xf32>
    %156 = arith.addf %152, %155 : vector<32x16xf32>
    %157 = vector.broadcast %28 : vector<32x1xf32> to vector<32x16xf32>
    %158 = arith.addf %156, %157 : vector<32x16xf32>
    %cst_62 = arith.constant 0.000000e+00 : f32
    %159 = vector.broadcast %cst_62 : f32 to vector<32x16xf32>
    %160 = arith.maximumf %158, %159 : vector<32x16xf32>
    %cst_63 = arith.constant dense<0.000000e+00> : vector<32x16xf32>
    %161 = tpu.matmul %25, %160, %cst_63 {dimension_numbers = #tpu.dot_dimension_numbers<[1], [0], [0], [1], [0, 0, 1, 1], [], []>} : vector<32x32xf32>, vector<32x16xf32>, vector<32x16xf32> -> vector<32x16xf32>
    %162 = vector.broadcast %29 : vector<32x1xf32> to vector<32x16xf32>
    %163 = arith.addf %161, %162 : vector<32x16xf32>
    %164 = arith.maximumf %140, %163 : vector<32x16xf32>
    %cst_64 = arith.constant dense<0.000000e+00> : vector<32x16xf32>
    %165 = tpu.matmul %26, %163, %cst_64 {dimension_numbers = #tpu.dot_dimension_numbers<[1], [0], [0], [1], [0, 0, 1, 1], [], []>} : vector<32x32xf32>, vector<32x16xf32>, vector<32x16xf32> -> vector<32x16xf32>
    %166 = vector.broadcast %30 : vector<32x1xf32> to vector<32x16xf32>
    %167 = arith.addf %165, %166 : vector<32x16xf32>
    %cst_65 = arith.constant 0.000000e+00 : f32
    %168 = vector.broadcast %cst_65 : f32 to vector<32x16xf32>
    %169 = arith.maximumf %167, %168 : vector<32x16xf32>
    %cst_66 = arith.constant dense<0.000000e+00> : vector<32x16xf32>
    %170 = tpu.matmul %27, %169, %cst_66 {dimension_numbers = #tpu.dot_dimension_numbers<[1], [0], [0], [1], [0, 0, 1, 1], [], []>} : vector<32x32xf32>, vector<32x16xf32>, vector<32x16xf32> -> vector<32x16xf32>
    %171 = vector.broadcast %31 : vector<32x1xf32> to vector<32x16xf32>
    %172 = arith.addf %170, %171 : vector<32x16xf32>
    %173 = arith.maximumf %149, %172 : vector<32x16xf32>
    %174 = vector.extract_strided_slice %22 {offsets = [6, 0, 0], sizes = [1, 3, 16], strides = [1, 1, 1]} : vector<8x3x16xf32> to vector<1x3x16xf32>
    %175 = vector.shape_cast %174 : vector<1x3x16xf32> to vector<3x16xf32>
    %cst_67 = arith.constant dense<0.000000e+00> : vector<32x16xf32>
    %176 = tpu.matmul %23, %175, %cst_67 {dimension_numbers = #tpu.dot_dimension_numbers<[1], [0], [0], [1], [0, 0, 1, 1], [], []>} : vector<32x3xf32>, vector<3x16xf32>, vector<32x16xf32> -> vector<32x16xf32>
    %177 = vector.extract_strided_slice %21 {offsets = [6, 0, 0], sizes = [1, 4, 16], strides = [1, 1, 1]} : vector<8x4x16xf32> to vector<1x4x16xf32>
    %178 = vector.shape_cast %177 : vector<1x4x16xf32> to vector<4x16xf32>
    %cst_68 = arith.constant dense<0.000000e+00> : vector<32x16xf32>
    %179 = tpu.matmul %24, %178, %cst_68 {dimension_numbers = #tpu.dot_dimension_numbers<[1], [0], [0], [1], [0, 0, 1, 1], [], []>} : vector<32x4xf32>, vector<4x16xf32>, vector<32x16xf32> -> vector<32x16xf32>
    %180 = arith.addf %176, %179 : vector<32x16xf32>
    %181 = vector.broadcast %28 : vector<32x1xf32> to vector<32x16xf32>
    %182 = arith.addf %180, %181 : vector<32x16xf32>
    %cst_69 = arith.constant 0.000000e+00 : f32
    %183 = vector.broadcast %cst_69 : f32 to vector<32x16xf32>
    %184 = arith.maximumf %182, %183 : vector<32x16xf32>
    %cst_70 = arith.constant dense<0.000000e+00> : vector<32x16xf32>
    %185 = tpu.matmul %25, %184, %cst_70 {dimension_numbers = #tpu.dot_dimension_numbers<[1], [0], [0], [1], [0, 0, 1, 1], [], []>} : vector<32x32xf32>, vector<32x16xf32>, vector<32x16xf32> -> vector<32x16xf32>
    %186 = vector.broadcast %29 : vector<32x1xf32> to vector<32x16xf32>
    %187 = arith.addf %185, %186 : vector<32x16xf32>
    %188 = arith.maximumf %164, %187 : vector<32x16xf32>
    %cst_71 = arith.constant dense<0.000000e+00> : vector<32x16xf32>
    %189 = tpu.matmul %26, %187, %cst_71 {dimension_numbers = #tpu.dot_dimension_numbers<[1], [0], [0], [1], [0, 0, 1, 1], [], []>} : vector<32x32xf32>, vector<32x16xf32>, vector<32x16xf32> -> vector<32x16xf32>
    %190 = vector.broadcast %30 : vector<32x1xf32> to vector<32x16xf32>
    %191 = arith.addf %189, %190 : vector<32x16xf32>
    %cst_72 = arith.constant 0.000000e+00 : f32
    %192 = vector.broadcast %cst_72 : f32 to vector<32x16xf32>
    %193 = arith.maximumf %191, %192 : vector<32x16xf32>
    %cst_73 = arith.constant dense<0.000000e+00> : vector<32x16xf32>
    %194 = tpu.matmul %27, %193, %cst_73 {dimension_numbers = #tpu.dot_dimension_numbers<[1], [0], [0], [1], [0, 0, 1, 1], [], []>} : vector<32x32xf32>, vector<32x16xf32>, vector<32x16xf32> -> vector<32x16xf32>
    %195 = vector.broadcast %31 : vector<32x1xf32> to vector<32x16xf32>
    %196 = arith.addf %194, %195 : vector<32x16xf32>
    %197 = arith.maximumf %173, %196 : vector<32x16xf32>
    %198 = vector.extract_strided_slice %22 {offsets = [7, 0, 0], sizes = [1, 3, 16], strides = [1, 1, 1]} : vector<8x3x16xf32> to vector<1x3x16xf32>
    %199 = vector.shape_cast %198 : vector<1x3x16xf32> to vector<3x16xf32>
    %cst_74 = arith.constant dense<0.000000e+00> : vector<32x16xf32>
    %200 = tpu.matmul %23, %199, %cst_74 {dimension_numbers = #tpu.dot_dimension_numbers<[1], [0], [0], [1], [0, 0, 1, 1], [], []>} : vector<32x3xf32>, vector<3x16xf32>, vector<32x16xf32> -> vector<32x16xf32>
    %201 = vector.extract_strided_slice %21 {offsets = [7, 0, 0], sizes = [1, 4, 16], strides = [1, 1, 1]} : vector<8x4x16xf32> to vector<1x4x16xf32>
    %202 = vector.shape_cast %201 : vector<1x4x16xf32> to vector<4x16xf32>
    %cst_75 = arith.constant dense<0.000000e+00> : vector<32x16xf32>
    %203 = tpu.matmul %24, %202, %cst_75 {dimension_numbers = #tpu.dot_dimension_numbers<[1], [0], [0], [1], [0, 0, 1, 1], [], []>} : vector<32x4xf32>, vector<4x16xf32>, vector<32x16xf32> -> vector<32x16xf32>
    %204 = arith.addf %200, %203 : vector<32x16xf32>
    %205 = vector.broadcast %28 : vector<32x1xf32> to vector<32x16xf32>
    %206 = arith.addf %204, %205 : vector<32x16xf32>
    %cst_76 = arith.constant 0.000000e+00 : f32
    %207 = vector.broadcast %cst_76 : f32 to vector<32x16xf32>
    %208 = arith.maximumf %206, %207 : vector<32x16xf32>
    %cst_77 = arith.constant dense<0.000000e+00> : vector<32x16xf32>
    %209 = tpu.matmul %25, %208, %cst_77 {dimension_numbers = #tpu.dot_dimension_numbers<[1], [0], [0], [1], [0, 0, 1, 1], [], []>} : vector<32x32xf32>, vector<32x16xf32>, vector<32x16xf32> -> vector<32x16xf32>
    %210 = vector.broadcast %29 : vector<32x1xf32> to vector<32x16xf32>
    %211 = arith.addf %209, %210 : vector<32x16xf32>
    %212 = arith.maximumf %188, %211 : vector<32x16xf32>
    %cst_78 = arith.constant dense<0.000000e+00> : vector<32x16xf32>
    %213 = tpu.matmul %26, %211, %cst_78 {dimension_numbers = #tpu.dot_dimension_numbers<[1], [0], [0], [1], [0, 0, 1, 1], [], []>} : vector<32x32xf32>, vector<32x16xf32>, vector<32x16xf32> -> vector<32x16xf32>
    %214 = vector.broadcast %30 : vector<32x1xf32> to vector<32x16xf32>
    %215 = arith.addf %213, %214 : vector<32x16xf32>
    %cst_79 = arith.constant 0.000000e+00 : f32
    %216 = vector.broadcast %cst_79 : f32 to vector<32x16xf32>
    %217 = arith.maximumf %215, %216 : vector<32x16xf32>
    %cst_80 = arith.constant dense<0.000000e+00> : vector<32x16xf32>
    %218 = tpu.matmul %27, %217, %cst_80 {dimension_numbers = #tpu.dot_dimension_numbers<[1], [0], [0], [1], [0, 0, 1, 1], [], []>} : vector<32x32xf32>, vector<32x16xf32>, vector<32x16xf32> -> vector<32x16xf32>
    %219 = vector.broadcast %31 : vector<32x1xf32> to vector<32x16xf32>
    %220 = arith.addf %218, %219 : vector<32x16xf32>
    %221 = arith.maximumf %197, %220 : vector<32x16xf32>
    %222 = arith.addf %212, %221 : vector<32x16xf32>
    %cst_81 = arith.constant 0.000000e+00 : f32
    %223 = vector.broadcast %cst_81 : f32 to vector<32x16xf32>
    %224 = arith.maximumf %222, %223 : vector<32x16xf32>
    %c0_82 = arith.constant 0 : index
    %c0_83 = arith.constant 0 : index
    %c0_84 = arith.constant 0 : index
    %225 = vector.load %arg12[%c0_82, %c0_83, %c0_84] : memref<1x32x16xf32, #tpu.memory_space<vmem>>, vector<1x32x16xf32>
    %226 = vector.shape_cast %225 : vector<1x32x16xf32> to vector<32x16xf32>
    %227 = vector.shape_cast %224 : vector<32x16xf32> to vector<1x32x16xf32>
    tpu.vector_store %arg12[%c0_82, %c0_83, %c0_84], %227 {strides = array<i32>} : memref<1x32x16xf32, #tpu.memory_space<vmem>>, vector<1x32x16xf32>,
    return
  }
  func.func @transform_0(%arg0: i32, %arg1: i32) -> (i32, i32, i32, i32) {
    %c0_i32 = arith.constant 0 : i32
    %c0_i32_0 = arith.constant 0 : i32
    %c0_i32_1 = arith.constant 0 : i32
    return %arg0, %c0_i32, %c0_i32_0, %arg1 : i32, i32, i32, i32
  }
  func.func @transform_1(%arg0: i32, %arg1: i32) -> (i32, i32) {
    %c0_i32 = arith.constant 0 : i32
    %c0_i32_0 = arith.constant 0 : i32
    %c0_i32_1 = arith.constant 0 : i32
    return %c0_i32, %c0_i32_0 : i32, i32
  }
  func.func @transform_2(%arg0: i32, %arg1: i32) -> (i32, i32) {
    %c0_i32 = arith.constant 0 : i32
    %c0_i32_0 = arith.constant 0 : i32
    %c0_i32_1 = arith.constant 0 : i32
    return %c0_i32, %c0_i32_0 : i32, i32
  }
  func.func @transform_3(%arg0: i32, %arg1: i32) -> (i32, i32) {
    %c0_i32 = arith.constant 0 : i32
    %c0_i32_0 = arith.constant 0 : i32
    %c0_i32_1 = arith.constant 0 : i32
    return %c0_i32, %c0_i32_0 : i32, i32
  }
  func.func @transform_4(%arg0: i32, %arg1: i32) -> (i32, i32) {
    %c0_i32 = arith.constant 0 : i32
    %c0_i32_0 = arith.constant 0 : i32
    %c0_i32_1 = arith.constant 0 : i32
    return %c0_i32, %c0_i32_0 : i32, i32
  }
  func.func @transform_5(%arg0: i32, %arg1: i32) -> (i32, i32) {
    %c0_i32 = arith.constant 0 : i32
    %c0_i32_0 = arith.constant 0 : i32
    %c0_i32_1 = arith.constant 0 : i32
    return %c0_i32, %c0_i32_0 : i32, i32
  }
  func.func @transform_6(%arg0: i32, %arg1: i32) -> (i32, i32) {
    %c0_i32 = arith.constant 0 : i32
    %c0_i32_0 = arith.constant 0 : i32
    %c0_i32_1 = arith.constant 0 : i32
    return %c0_i32, %c0_i32_0 : i32, i32
  }
  func.func @transform_7(%arg0: i32, %arg1: i32) -> (i32, i32) {
    %c0_i32 = arith.constant 0 : i32
    %c0_i32_0 = arith.constant 0 : i32
    %c0_i32_1 = arith.constant 0 : i32
    return %c0_i32, %c0_i32_0 : i32, i32
  }
  func.func @transform_8(%arg0: i32, %arg1: i32) -> (i32, i32) {
    %c0_i32 = arith.constant 0 : i32
    %c0_i32_0 = arith.constant 0 : i32
    %c0_i32_1 = arith.constant 0 : i32
    return %c0_i32, %c0_i32_0 : i32, i32
  }
  func.func @transform_9(%arg0: i32, %arg1: i32) -> (i32, i32) {
    %c0_i32 = arith.constant 0 : i32
    %c0_i32_0 = arith.constant 0 : i32
    %c0_i32_1 = arith.constant 0 : i32
    return %c0_i32, %c0_i32_0 : i32, i32
  }
  func.func @transform_10(%arg0: i32, %arg1: i32) -> (i32, i32, i32) {
    %c0_i32 = arith.constant 0 : i32
    %c0_i32_0 = arith.constant 0 : i32
    return %arg0, %c0_i32, %arg1 : i32, i32, i32
  }
}

</mosaic_0001>

<bundles_post_ra>
// kernel: tpu_custom_call.1
= control target key start
LH: loop header
LB: loop body
LE: loop exit
PB: predicated region body
PF: predicated region fallthrough
CT: control target
= control target key end

     0   :  { %s5595_s13 = smov 0   ;;  %s5597_s14 = smov 0   ;;  %s6724_s0 = inlined_call_operand.vmem [shape: f32[2,8,4,16], index: 0, kind: input, shape index: {}]   ;;  %s6725_s1 = inlined_call_operand.vmem [shape: f32[32,3], index: 1, kind: input, shape index: {}]   ;;  %s6726_s2 = inlined_call_operand.vmem [shape: f32[32,4], index: 2, kind: input, shape index: {}]   ;;  %s6727_s3 = inlined_call_operand.vmem [shape: f32[32,1], index: 3, kind: input, shape index: {}]   ;;  %s6728_s4 = inlined_call_operand.vmem [shape: f32[32,32], index: 4, kind: input, shape index: {}]   ;;  %s6729_s5 = inlined_call_operand.vmem [shape: f32[32,1], index: 5, kind: input, shape index: {}]   ;;  %s6730_s6 = inlined_call_operand.vmem [shape: f32[32,32], index: 6, kind: input, shape index: {}]   ;;  %s6731_s7 = inlined_call_operand.vmem [shape: f32[32,1], index: 7, kind: input, shape index: {}]   ;;  %s6732_s8 = inlined_call_operand.vmem [shape: f32[32,32], index: 8, kind: input, shape index: {}]   ;;  %s6733_s9 = inlined_call_operand.vmem [shape: f32[32,1], index: 9, kind: input, shape index: {}]   ;;  %s6734_s10 = inlined_call_operand.vmem [shape: f32[2,32,16], index: 10, kind: output, shape index: {}]  }
   0x1   :  { %s5599_s15 = smov 0  }
   0x2 LB: > { %s32_s16 = sadd.s32 1, %s5533_s14  ;;  %p4514_p0 = scmp.ge.s32.totalorder %s5537_s15, 1  ;;  %s5537_s15 = sphi %s5599_s15, %s20_s15   ;;  %s5533_s14 = sphi %s5597_s14, %s6818_s14   ;;  %s5529_s13 = sphi %s5595_s13, %s6817_s13  }
   0x3   : > { %p34_p1 = scmp.ge.s32.totalorder %s32_s16, 2  ;;  %p331_p2 = scmp.lt.s32.totalorder %s5537_s15, 3 }
   0x5   : > { %s6820_s16 = smov (%p34_p1, %s32_s16), 0  ;;  %p332_p3 = pnand %p4514_p0, %p331_p2 }
   0x7   : > { %335 = sbr.rel (%p332_p3) target bundleno = 5372 (0x14fc), region = 60 }
   0xc   : > { %p375_p4 = scmp.lt.s32.totalorder %s5529_s13, 1  ;;  %v5616_v0 = vld [vmem:[%s6725_s1] sm:$0xff]  ;;  %vm771_vm0 = vcmask 23552   ;;  %vm669_vm1 = vcmask 31744   ;;  %v5539_v2 = vmov 0   ;;  %v656_v3 = vld [vmem:[%s6727_s3 + $0x18] sm:$0xff] }
   0xd   : > { %4981 = vmatprep.mubr.msk.f32.mxu1 %vm771_vm0, %v5616_v0  ;;  %v5623_v1 = vld [vmem:[%s6726_s2] sm:$0xff]  ;;  %5460 = vset.pattern.permute.xlu0 %v5539_v2  ;;  %vm784_vm2 = vcmask 1042432   ;;  %v654_v4 = vld [vmem:[%s6727_s3 + $0x8] sm:$0xff]  ;;  %v655_v5 = vld [vmem:[%s6727_s3 + $0x10] sm:$0xff]  ;;  %vm407_vm3 = vcmask 125952   ;;  %vm682_vm6 = vcmask 1043456  }
   0xe   : > { %6759 = vst [vmem:[#allocation2_spill] sm:$0xff] %v5623_v1  ;;  %s6822_s13 = smov (!%p375_p4, %s5529_s13), 1  ;;  %4973 = vmatprep.mubr.msk.f32.mxu0 %vm669_vm1, %v5623_v1  ;;  %5461 = vset.pattern.permute.xlu1 %v5539_v2  ;;  %v5652_v7 = vld [vmem:[%s6725_s1 + $0x8] sm:$0xff]  ;;  %v653_v8 = vld [vmem:[%s6727_s3] sm:$0xff]  ;;  %v5666_v10 = vld [vmem:[%s6725_s1 + $0x10] sm:$0xff]  ;;  %vm921_vm7 = vcmask 261120  }
   0xf   : > { %s4697_s23 = sshll.u32 %s6822_s13, 5  ;;  %890 = vperm.xlu0 %5460, %v656_v3   ;;  %880 = vperm.xlu1 %5461, %v654_v4   ;;  %v660_v12 = vld [vmem:[%s6729_s5 + $0x18] sm:$0xff]  ;;  %v659_v15 = vld [vmem:[%s6729_s5 + $0x10] sm:$0xff]  ;;  %v658_v17 = vld [vmem:[%s6729_s5 + $0x8] sm:$0xff] }
  0x10   : > { %s5641_s28 = scalar_lea.vmem %s6724_s0, %s4697_s23  ;;  %v5682_v14 = vld [vmem:[%s6725_s1 + $0x18] sm:$0xff]  ;;  %v657_v19 = vld [vmem:[%s6729_s5] sm:$0xff]  ;;  %v663_v23 = vld [vmem:[%s6731_s7 + $0x10] sm:$0xff]  ;;  %s390_s20 = scalar_lea.vmem %s6734_s10, %s4697_s23 }
  0x11   : > { %v5647_v6 = vld [vmem:[%s5641_s28] sm:$0xf]  ;;  %v664_v21 = vld [vmem:[%s6731_s7 + $0x18] sm:$0xff]  ;;  %v662_v25 = vld [vmem:[%s6731_s7 + $0x8] sm:$0xff] }
  0x12   : > { %6760 = vst [vmem:[#allocation3_spill] sm:$0xff] %v5647_v6  ;;  %4979 = vmatprep.subr.msk.mxu1 %vm784_vm2, %v5647_v6  ;;  %v5661_v9 = vsub.f32 %v5647_v6, %v5647_v6  ;;  %v661_v27 = vld [vmem:[%s6731_s7] sm:$0xff]  ;;  %v666_v31 = vld [vmem:[%s6733_s9 + $0x8] sm:$0xff]  ;;  %v667_v34 = vld [vmem:[%s6733_s9 + $0x10] sm:$0xff] }
  0x13   : > { %4980 = vmatpush3.msk.msra.mxu1 %vm784_vm2, %v5647_v6  ;;  %885 = vperm.xlu0 %5460, %v655_v5   ;;  %v665_v29 = vld [vmem:[%s6733_s9] sm:$0xff]  ;;  %v668_v35 = vld [vmem:[%s6733_s9 + $0x18] sm:$0xff]  ;;  %v5725_v50 = vld [vmem:[%s6726_s2 + $0x8] sm:$0xff] }
  0x14   : > { %v408_v11 = vsel %vm407_vm3, %v5661_v9, 0.0  ;;  %4982 = vmatmul.mubr.msk.f32.vlgmr.msra.gmra.mxu1 %vm771_vm0, %v5652_v7  ;;  %875 = vperm.xlu1 %5461, %v653_v8   ;;  %v5731_v51 = vld [vmem:[%s6726_s2 + $0x10] sm:$0xff]  ;;  %v5741_v52 = vld [vmem:[%s6726_s2 + $0x18] sm:$0xff]  ;;  %v5748_v53 = vld [vmem:[%s6728_s4] sm:$0xff] }
  0x15   : > { %v409_v13 = vrot.slane %v408_v11, 4  ;;  %4984 = vmatprep.mubr.msk.f32.mxu1 %vm771_vm0, %v5666_v10 }
  0x17   : > { %v410_v16 = vadd.f32 %v409_v13, %v408_v11  ;;  %918 = vperm.xlu0 %5460, %v660_v12  }
  0x18   : > { %4985 = vmatmul.mubr.msk.f32.gmra.mxu1 %vm771_vm0, %v5682_v14  ;;  %913 = vperm.xlu1 %5461, %v659_v15  }
  0x19   : > { %v411_v18 = vrot.slane %v410_v16, 2 }
  0x1b   : > { %v412_v20 = vadd.f32 %v411_v18, %v410_v16  ;;  %908 = vperm.xlu0 %5460, %v658_v17  }
  0x1c   : > { %903 = vperm.xlu1 %5461, %v657_v19  }
  0x1d   : > { %v413_v22 = vrot.slane %v412_v20, 1 }
  0x1f   : > { %v414_v24 = vadd.f32 %v413_v22, %v412_v20  ;;  %1036 = vperm.xlu0 %5460, %v664_v21   ;;  %v5767_v20 = vld [vmem:[%s6728_s4 + $0x8] sm:$0xff]  ;;  %v5772_v21 = vld [vmem:[%s6728_s4 + $0x10] sm:$0xff]  ;;  %v5781_v22 = vld [vmem:[%s6728_s4 + $0x18] sm:$0xff] }
  0x20   : > { %1031 = vperm.xlu1 %5461, %v663_v23   ;;  %v5788_v23 = vld [vmem:[%s6730_s6] sm:$0xff] }
  0x21   : > { %v465_v26 = vmul.f32 0.25, %v414_v24  ;;  %5009 = vmatprep.mubr.msk.f32.mxu1 %vm921_vm7, %v5788_v23 }
  0x23   : > { %v473_v28 = vsub.f32 %v5661_v9, %v465_v26  ;;  %1026 = vperm.xlu0 %5460, %v662_v25  }
  0x24   : > { %1021 = vperm.xlu1 %5461, %v661_v27  }
  0x25   : > { %v481_v30 = vmul.f32 %v473_v28, %v473_v28 }
  0x27   : > { %v489_v32 = vsel %vm407_vm3, %v481_v30, 0.0  ;;  %1142 = vperm.xlu0 %5460, %v665_v29  }
  0x28   : > { %v490_v33 = vrot.slane %v489_v32, 4  ;;  %1147 = vperm.xlu1 %5461, %v666_v31  }
  0x2a   : > { %v491_v36 = vadd.f32 %v490_v33, %v489_v32 }
  0x2b   : > { %1152 = vperm.xlu0 %5460, %v667_v34  }
  0x2c   : > { %v492_v37 = vrot.slane %v491_v36, 2  ;;  %1157 = vperm.xlu1 %5461, %v668_v35  }
  0x2e   : > { %v493_v38 = vadd.f32 %v492_v37, %v491_v36  ;;  %v5821_v36 = vld [vmem:[%s6730_s6 + $0x8] sm:$0xff]  ;;  %v5827_v37 = vld [vmem:[%s6730_s6 + $0x10] sm:$0xff] }
  0x30   : > { %v494_v39 = vrot.slane %v493_v38, 1 }
  0x32   : > { %v495_v40 = vadd.f32 %v494_v39, %v493_v38  ;;  %v5837_v38 = vld [vmem:[%s6730_s6 + $0x18] sm:$0xff]  ;;  %v5844_v39 = vld [vmem:[%s5641_s28 + $0x4] sm:$0xf] }
  0x33   : > { %6761 = vst [vmem:[#allocation4_spill] sm:$0xff] %v5837_v38 }
  0x34   : > { %v545_v41 = vmul.f32 0.25, %v495_v40  ;;  %v400_v40 = vsub.f32 %v5844_v39, %v5647_v6 }
  0x36   : > { %5462 = vrsqrt.f32 %v545_v41  ;;  %vm555_vm4 = vcmp.eq.f32.partialorder %v545_v41, inf  ;;  %v558_v43 = vand.u32 2147483648, %v545_v41  ;;  %vm557_vm5 = vcmp.eq.f32.partialorder %v545_v41, 0.0 }
  0x43   : > { %v5463_v42 = vpop.eup %5462 }
  0x44   : > { %v554_v44 = vmul.f32 %v5463_v42, %v545_v41 }
  0x46   : > { %v556_v45 = vsel %vm555_vm4, %v545_v41, %v554_v44  ;;  %v415_v41 = vsel %vm407_vm3, %v400_v40, 0.0 }
  0x47   : > { %v559_v46 = vsel %vm557_vm5, %v558_v43, %v556_v45  ;;  %v416_v42 = vrot.slane %v415_v41, 4 }
  0x48   : > { %v609_v47 = vadd.f32 1e-06, %v559_v46 }
  0x49   : > { %v417_v43 = vadd.f32 %v416_v42, %v415_v41 }
  0x4a   : > { %5464 = vrcp.f32 %v609_v47 }
  0x4b   : > { %v418_v44 = vrot.slane %v417_v43, 2 }
  0x4d   : > { %v419_v45 = vadd.f32 %v418_v44, %v417_v43 }
  0x4f   : > { %v420_v46 = vrot.slane %v419_v45, 1 }
  0x51   : > { %v421_v47 = vadd.f32 %v420_v46, %v419_v45 }
  0x57   : > { %v5465_v48 = vpop.eup %5464 }
  0x58   : > { %v625_v49 = vmul.f32 %v5465_v48, %v5661_v9  ;;  %v466_v48 = vmul.f32 0.25, %v421_v47 }
  0x5a   : > { %4971 = vmatprep.subr.msk.mxu0 %vm682_vm6, %v625_v49 }
  0x5b   : > { %4972 = vmatpush3.msk.msra.mxu0 %vm682_vm6, %v625_v49  ;;  %v474_v49 = vsub.f32 %v400_v40, %v466_v48 }
  0x5c   : > { %4974 = vmatmul.mubr.msk.f32.vlgmr.msra.gmra.mxu0 %vm669_vm1, %v5725_v50 }
  0x5d   : > { %4976 = vmatprep.mubr.msk.f32.mxu0 %vm669_vm1, %v5731_v51 }
  0x60   : > { %4977 = vmatmul.mubr.msk.f32.gmra.mxu0 %vm669_vm1, %v5741_v52 }
  0x61   : > { %4995 = vmatprep.mubr.msk.f32.mxu0 %vm921_vm7, %v5748_v53 }
  0x8a   : > { %v5752_v57 = vpop.permute.xlu0 %890  ;;  %v5754_v60 = vpop.permute.xlu1 %880 }
  0x8e   : > { %v5757_v9 = vpop.permute.xlu0 %885 }
  0x8f   : > { %v5761_v15 = vpop.permute.xlu1 %875 }
  0x92   : > { %v5792_v25 = vpop.permute.xlu0 %918 }
  0x93   : > { %v5794_v27 = vpop.permute.xlu1 %913 }
  0x96   : > { %v5803_v32 = vpop.permute.xlu0 %908 }
  0x97   : > { %v5810_v34 = vpop.permute.xlu1 %903 }
  0xd4   : > { %v4983_v54 = vpop.f32.mrf.mxu1 }
  0xd6   : > { %v854_v55 = vpop.f32.mrf.mxu1 }
  0xd8   : > { %v4986_v59 = vpop.f32.mrf.mxu1 }
  0xda   : > { %v864_v2 = vpop.f32.mrf.mxu1 }
 0x11c   : > { %v4975_v56 = vpop.f32.mrf.mxu0 }
 0x11d   : > { %v860_v62 = vadd.f32 %v4983_v54, %v4975_v56  ;;  %v482_v54 = vmul.f32 %v474_v49, %v474_v49 }
 0x11e   : > { %v752_v58 = vpop.f32.mrf.mxu0 }
 0x11f   : > { %v855_v4 = vadd.f32 %v854_v55, %v752_v58  ;;  %v894_v11 = vadd.f32 %v5754_v60, %v860_v62  ;;  %v496_v55 = vsel %vm407_vm3, %v482_v54, 0.0  ;;  %v5882_v54 = vld [vmem:[%s6732_s8 + $0x8] sm:$0xff] }
 0x120   : > { %v4978_v61 = vpop.f32.mrf.mxu0  ;;  %v497_v56 = vrot.slane %v496_v55, 4 }
 0x121   : > { %v870_v63 = vadd.f32 %v4986_v59, %v4978_v61  ;;  %v893_v16 = vadd.f32 %v5761_v15, %v855_v4  ;;  %v898_v18 = vmax.f32 %v894_v11, 0.0 }
 0x122   : > { %v762_v3 = vpop.f32.mrf.mxu0  ;;  %v498_v58 = vadd.f32 %v497_v56, %v496_v55  ;;  %v5887_v55 = vld [vmem:[%s6732_s8 + $0x10] sm:$0xff]  ;;  %v5900_v56 = vld [vmem:[%s6732_s8 + $0x18] sm:$0xff] }
 0x123   : > { %v896_v5 = vadd.f32 %v5752_v57, %v870_v63  ;;  %v865_v8 = vadd.f32 %v864_v2, %v762_v3  ;;  %v897_v19 = vmax.f32 %v893_v16, 0.0 }
 0x124   : > { %v499_v59 = vrot.slane %v498_v58, 2 }
 0x125   : > { %v900_v12 = vmax.f32 %v896_v5, 0.0  ;;  %v895_v13 = vadd.f32 %v5757_v9, %v865_v8 }
 0x126   : > { %v500_v61 = vadd.f32 %v499_v59, %v498_v58 }
 0x127   : > { %v899_v17 = vmax.f32 %v895_v13, 0.0  ;;  %4987 = vmatprep.subr.mxu0 %v900_v12  ;;  %v5853_v13 = vld [vmem:[%s6732_s8] sm:$0xff] }
 0x128   : > { %4988 = vmatpush3.msra.mxu0 %v900_v12  ;;  %v501_v62 = vrot.slane %v500_v61, 1 }
 0x129   : > { %4989 = vmatprep.subr.mxu0 %v899_v17 }
 0x12a   : > { %4990 = vmatpush3.msra.mxu0 %v899_v17  ;;  %v502_v63 = vadd.f32 %v501_v62, %v500_v61 }
 0x12b   : > { %4991 = vmatprep.subr.mxu0 %v898_v18 }
 0x12c   : > { %4992 = vmatpush3.msra.mxu0 %v898_v18  ;;  %v546_v2 = vmul.f32 0.25, %v502_v63  ;;  %v5867_v18 = vpop.permute.xlu0 %1036 }
 0x12d   : > { %4993 = vmatprep.subr.mxu0 %v897_v19 }
 0x12e   : > { %4994 = vmatpush3.msra.mxu0 %v897_v19  ;;  %5466 = vrsqrt.f32 %v546_v2  ;;  %vm562_vm8 = vcmp.eq.f32.partialorder %v546_v2, inf  ;;  %v565_v5 = vand.u32 2147483648, %v546_v2  ;;  %vm564_vm9 = vcmp.eq.f32.partialorder %v546_v2, 0.0 }
 0x12f   : > { %4996 = vmatmul.mubr.msk.f32.vlgmr.msra.gmra.mxu0 %vm921_vm7, %v5767_v20 }
 0x130   : > { %4998 = vmatprep.mubr.msk.f32.mxu0 %vm921_vm7, %v5772_v21 }
 0x133   : > { %4999 = vmatmul.mubr.msk.f32.gmra.mxu0 %vm921_vm7, %v5781_v22 }
 0x134   : > { %5023 = vmatprep.mubr.msk.f32.mxu0 %vm921_vm7, %v5853_v13 }
 0x13b   : > { %v5467_v3 = vpop.eup %5466 }
 0x13c   : > { %v561_v4 = vmul.f32 %v5467_v3, %v546_v2 }
 0x13e   : > { %v563_v8 = vsel %vm562_vm8, %v546_v2, %v561_v4 }
 0x13f   : > { %v566_v11 = vsel %vm564_vm9, %v565_v5, %v563_v8 }
 0x140   : > { %v610_v12 = vadd.f32 1e-06, %v566_v11 }
 0x142   : > { %5468 = vrcp.f32 %v610_v12 }
 0x14f   : > { %v5469_v16 = vpop.eup %5468 }
 0x150   : > { %v626_v17 = vmul.f32 %v5469_v16, %v400_v40  ;;  %v5872_v40 = vpop.permute.xlu0 %1026 }
 0x1ef   : > { %v4997_v24 = vpop.f32.mrf.mxu0 }
 0x1f0   : > { %v5807_v33 = vadd.f32 %v4997_v24, %v5803_v32  ;;  %v5869_v24 = vpop.permute.xlu1 %1031 }
 0x1f1   : > { %v1000_v26 = vpop.f32.mrf.mxu0 }
 0x1f2   : > { %v5814_v35 = vadd.f32 %v1000_v26, %v5810_v34 }
 0x1f3   : > { %v5000_v28 = vpop.f32.mrf.mxu0 }
 0x1f4   : > { %v5797_v29 = vadd.f32 %v5000_v28, %v5792_v25  ;;  %v5876_v45 = vpop.permute.xlu1 %1021 }
 0x1f5   : > { %v1010_v30 = vpop.f32.mrf.mxu0 }
 0x1f6   : > { %v5800_v31 = vadd.f32 %v1010_v30, %v5794_v27  ;;  %5001 = vmatprep.subr.mxu1 %v5797_v29 }
 0x1f7   : > { %5002 = vmatpush3.msra.mxu1 %v5797_v29 }
 0x1f8   : > { %5003 = vmatprep.subr.mxu1 %v5800_v31 }
 0x1f9   : > { %5004 = vmatpush3.msra.mxu1 %v5800_v31 }
 0x1fa   : > { %5005 = vmatprep.subr.mxu1 %v5807_v33 }
 0x1fb   : > { %5006 = vmatpush3.msra.mxu1 %v5807_v33 }
 0x1fc   : > { %5007 = vmatprep.subr.mxu1 %v5814_v35 }
 0x1fd   : > { %5008 = vmatpush3.msra.mxu1 %v5814_v35 }
 0x1fe   : > { %5010 = vmatmul.mubr.msk.f32.vlgmr.msra.gmra.mxu1 %vm921_vm7, %v5821_v36  ;;  %5029 = vmatprep.subr.msk.mxu1 %vm682_vm6, %v626_v17 }
 0x1ff   : > { %5012 = vmatprep.mubr.msk.f32.mxu1 %vm921_vm7, %v5827_v37  ;;  %5030 = vmatpush3.msk.msra.mxu1 %vm682_vm6, %v626_v17 }
 0x202   : > { %5013 = vmatmul.mubr.msk.f32.gmra.mxu1 %vm921_vm7, %v5837_v38 }
 0x203   : > { %5031 = vmatprep.mubr.msk.f32.mxu1 %vm669_vm1, %v5623_v1 }
 0x206   : > { %5032 = vmatmul.mubr.msk.f32.vlgmr.msra.gmra.mxu1 %vm669_vm1, %v5725_v50 }
 0x207   : > { %5034 = vmatprep.mubr.msk.f32.mxu1 %vm669_vm1, %v5731_v51 }
 0x20a   : > { %5035 = vmatmul.mubr.msk.f32.gmra.mxu1 %vm669_vm1, %v5741_v52 }
 0x20b   : > { %5053 = vmatprep.mubr.msk.f32.mxu1 %vm921_vm7, %v5748_v53 }
 0x2be   : > { %v5011_v19 = vpop.f32.mrf.mxu1 }
 0x2bf   : > { %v1123_v42 = vadd.f32 %v5011_v19, %v5872_v40 }
 0x2c0   : > { %v1117_v26 = vpop.f32.mrf.mxu1 }
 0x2c1   : > { %v1118_v46 = vadd.f32 %v1117_v26, %v5876_v45  ;;  %v1137_v48 = vmax.f32 %v1123_v42, 0.0 }
 0x2c2   : > { %v5014_v28 = vpop.f32.mrf.mxu1 }
 0x2c3   : > { %v1133_v30 = vadd.f32 %v5014_v28, %v5867_v18  ;;  %v1136_v49 = vmax.f32 %v1118_v46, 0.0 }
 0x2c4   : > { %v1127_v41 = vpop.f32.mrf.mxu1 }
 0x2c5   : > { %v1139_v43 = vmax.f32 %v1133_v30, 0.0  ;;  %v1128_v44 = vadd.f32 %v1127_v41, %v5869_v24 }
 0x2c6   : > { %v5033_v59 = vpop.f32.mrf.mxu1 }
 0x2c7   : > { %v1138_v47 = vmax.f32 %v1128_v44, 0.0  ;;  %5015 = vmatprep.subr.mxu0 %v1139_v43 }
 0x2c8   : > { %5016 = vmatpush3.msra.mxu0 %v1139_v43  ;;  %v1326_v63 = vpop.f32.mrf.mxu1 }
 0x2c9   : > { %5017 = vmatprep.subr.mxu0 %v1138_v47 }
 0x2ca   : > { %5018 = vmatpush3.msra.mxu0 %v1138_v47  ;;  %v5036_v3 = vpop.f32.mrf.mxu1 }
 0x2cb   : > { %5019 = vmatprep.subr.mxu0 %v1137_v48 }
 0x2cc   : > { %5020 = vmatpush3.msra.mxu0 %v1137_v48  ;;  %v1336_v12 = vpop.f32.mrf.mxu1 }
 0x2cd   : > { %5021 = vmatprep.subr.mxu0 %v1136_v49 }
 0x2ce   : > { %5022 = vmatpush3.msra.mxu0 %v1136_v49 }
 0x2cf   : > { %5024 = vmatmul.mubr.msk.f32.vlgmr.msra.gmra.mxu0 %vm921_vm7, %v5882_v54  ;;  %5037 = vmatprep.subr.msk.mxu0 %vm784_vm2, %v5844_v39 }
 0x2d0   : > { %5038 = vmatpush3.msk.msra.mxu0 %vm784_vm2, %v5844_v39  ;;  %5026 = vmatprep.mubr.msk.f32.mxu0 %vm921_vm7, %v5887_v55 }
 0x2d3   : > { %5027 = vmatmul.mubr.msk.f32.gmra.mxu0 %vm921_vm7, %v5900_v56 }
 0x2d4   : > { %5039 = vmatprep.mubr.msk.f32.mxu0 %vm771_vm0, %v5616_v0 }
 0x2d7   : > { %5040 = vmatmul.mubr.msk.f32.vlgmr.msra.gmra.mxu0 %vm771_vm0, %v5652_v7 }
 0x2d8   : > { %5042 = vmatprep.mubr.msk.f32.mxu0 %vm771_vm0, %v5666_v10 }
 0x2db   : > { %5043 = vmatmul.mubr.msk.f32.gmra.mxu0 %vm771_vm0, %v5682_v14 }
 0x2dc   : > { %5067 = vmatprep.mubr.msk.f32.mxu0 %vm921_vm7, %v5788_v23 }
 0x38f   : > { %v5914_v39 = vpop.f32.mrf.mxu0 }
 0x391   : > { %v5916_v58 = vpop.f32.mrf.mxu0 }
 0x393   : > { %v5918_v61 = vpop.f32.mrf.mxu0 }
 0x395   : > { %v5920_v62 = vpop.f32.mrf.mxu0 }
 0x397   : > { %v5041_v2 = vpop.f32.mrf.mxu0 }
 0x398   : > { %v1420_v8 = vadd.f32 %v5041_v2, %v5033_v59 }
 0x399   : > { %v1414_v4 = vpop.f32.mrf.mxu0 }
 0x39a   : > { %v1415_v17 = vadd.f32 %v1414_v4, %v1326_v63  ;;  %v1434_v28 = vadd.f32 %v1420_v8, %v5754_v60 }
 0x39b   : > { %v5044_v5 = vpop.f32.mrf.mxu0 }
 0x39c   : > { %v1430_v11 = vadd.f32 %v5044_v5, %v5036_v3  ;;  %v1433_v42 = vadd.f32 %v1415_v17, %v5761_v15  ;;  %v1438_v44 = vmax.f32 %v1434_v28, 0.0  ;;  %v393_v5 = vld [vmem:[%s5641_s28 + $0x8] sm:$0xf] }
 0x39d   : > { %v1424_v16 = vpop.f32.mrf.mxu0  ;;  %v401_v8 = vsub.f32 %v393_v5, %v5647_v6 }
 0x39e   : > { %v1436_v19 = vadd.f32 %v1430_v11, %v5752_v57  ;;  %v1425_v26 = vadd.f32 %v1424_v16, %v1336_v12  ;;  %v1437_v46 = vmax.f32 %v1433_v42, 0.0 }
 0x39f   : > { %v422_v11 = vsel %vm407_vm3, %v401_v8, 0.0 }
 0x3a0   : > { %v1440_v30 = vmax.f32 %v1436_v19, 0.0  ;;  %v1435_v41 = vadd.f32 %v1425_v26, %v5757_v9  ;;  %v423_v12 = vrot.slane %v422_v11, 4 }
 0x3a2   : > { %v1439_v43 = vmax.f32 %v1435_v41, 0.0  ;;  %5045 = vmatprep.subr.mxu1 %v1440_v30  ;;  %v424_v16 = vadd.f32 %v423_v12, %v422_v11 }
 0x3a3   : > { %5046 = vmatpush3.msra.mxu1 %v1440_v30 }
 0x3a4   : > { %5047 = vmatprep.subr.mxu1 %v1439_v43  ;;  %v425_v17 = vrot.slane %v424_v16, 2 }
 0x3a5   : > { %5048 = vmatpush3.msra.mxu1 %v1439_v43 }
 0x3a6   : > { %5049 = vmatprep.subr.mxu1 %v1438_v44  ;;  %v426_v19 = vadd.f32 %v425_v17, %v424_v16 }
 0x3a7   : > { %5050 = vmatpush3.msra.mxu1 %v1438_v44 }
 0x3a8   : > { %5051 = vmatprep.subr.mxu1 %v1437_v46  ;;  %v427_v26 = vrot.slane %v426_v19, 1 }
 0x3a9   : > { %5052 = vmatpush3.msra.mxu1 %v1437_v46 }
 0x3aa   : > { %5054 = vmatmul.mubr.msk.f32.vlgmr.msra.gmra.mxu1 %vm921_vm7, %v5767_v20  ;;  %v428_v28 = vadd.f32 %v427_v26, %v426_v19 }
 0x3ab   : > { %5056 = vmatprep.mubr.msk.f32.mxu1 %vm921_vm7, %v5772_v21 }
 0x3ac   : > { %v467_v30 = vmul.f32 0.25, %v428_v28 }
 0x3ae   : > { %5057 = vmatmul.mubr.msk.f32.gmra.mxu1 %vm921_vm7, %v5781_v22  ;;  %v475_v41 = vsub.f32 %v401_v8, %v467_v30 }
 0x3af   : > { %5081 = vmatprep.mubr.msk.f32.mxu1 %vm921_vm7, %v5853_v13 }
 0x3b0   : > { %v483_v42 = vmul.f32 %v475_v41, %v475_v41 }
 0x3b2   : > { %v503_v43 = vsel %vm407_vm3, %v483_v42, 0.0 }
 0x3b3   : > { %v504_v44 = vrot.slane %v503_v43, 4 }
 0x3b5   : > { %v505_v46 = vadd.f32 %v504_v44, %v503_v43 }
 0x46a   : > { %v5055_v47 = vpop.f32.mrf.mxu1 }
 0x46b   : > { %v5943_v3 = vadd.f32 %v5055_v47, %v5803_v32  ;;  %v506_v47 = vrot.slane %v505_v46, 2 }
 0x46c   : > { %v1507_v48 = vpop.f32.mrf.mxu1 }
 0x46d   : > { %v5948_v4 = vadd.f32 %v1507_v48, %v5810_v34  ;;  %v507_v48 = vadd.f32 %v506_v47, %v505_v46 }
 0x46e   : > { %v5058_v49 = vpop.f32.mrf.mxu1 }
 0x46f   : > { %v5935_v59 = vadd.f32 %v5058_v49, %v5792_v25  ;;  %v508_v49 = vrot.slane %v507_v48, 1 }
 0x470   : > { %v1517_v63 = vpop.f32.mrf.mxu1 }
 0x471   : > { %v5938_v2 = vadd.f32 %v1517_v63, %v5794_v27  ;;  %5059 = vmatprep.subr.mxu0 %v5935_v59  ;;  %v509_v63 = vadd.f32 %v508_v49, %v507_v48  ;;  %v6000_v48 = vpop.permute.xlu0 %1142 }
 0x472   : > { %5060 = vmatpush3.msra.mxu0 %v5935_v59 }
 0x473   : > { %5061 = vmatprep.subr.mxu0 %v5938_v2  ;;  %v547_v6 = vmul.f32 0.25, %v509_v63 }
 0x474   : > { %5062 = vmatpush3.msra.mxu0 %v5938_v2 }
 0x475   : > { %5063 = vmatprep.subr.mxu0 %v5943_v3  ;;  %5470 = vrsqrt.f32 %v547_v6  ;;  %vm569_vm10 = vcmp.eq.f32.partialorder %v547_v6, inf  ;;  %v572_v11 = vand.u32 2147483648, %v547_v6  ;;  %vm571_vm11 = vcmp.eq.f32.partialorder %v547_v6, 0.0 }
 0x476   : > { %5064 = vmatpush3.msra.mxu0 %v5943_v3 }
 0x477   : > { %5065 = vmatprep.subr.mxu0 %v5948_v4 }
 0x478   : > { %5066 = vmatpush3.msra.mxu0 %v5948_v4 }
 0x479   : > { %5068 = vmatmul.mubr.msk.f32.vlgmr.msra.gmra.mxu0 %vm921_vm7, %v5821_v36 }
 0x47a   : > { %5070 = vmatprep.mubr.msk.f32.mxu0 %vm921_vm7, %v5827_v37 }
 0x47d   : > { %5071 = vmatmul.mubr.msk.f32.gmra.mxu0 %vm921_vm7, %v5837_v38 }
 0x47e   : > { %5089 = vmatprep.mubr.msk.f32.mxu0 %vm669_vm1, %v5623_v1 }
 0x482   : > { %v5471_v1 = vpop.eup %5470 }
 0x483   : > { %v568_v38 = vmul.f32 %v5471_v1, %v547_v6 }
 0x485   : > { %v570_v12 = vsel %vm569_vm10, %v547_v6, %v568_v38 }
 0x486   : > { %v573_v16 = vsel %vm571_vm11, %v572_v11, %v570_v12 }
 0x487   : > { %v611_v17 = vadd.f32 1e-06, %v573_v16 }
 0x489   : > { %5472 = vrcp.f32 %v611_v17  ;;  %v6011_v17 = vadd.f32 %v5916_v58, %v6000_v48 }
 0x496   : > { %v5473_v19 = vpop.eup %5472 }
 0x497   : > { %v627_v26 = vmul.f32 %v5473_v19, %v401_v8 }
 0x499   : > { %5087 = vmatprep.subr.msk.mxu0 %vm682_vm6, %v627_v26 }
 0x49a   : > { %5088 = vmatpush3.msk.msra.mxu0 %vm682_vm6, %v627_v26 }
 0x49b   : > { %5090 = vmatmul.mubr.msk.f32.vlgmr.msra.gmra.mxu0 %vm669_vm1, %v5725_v50 }
 0x49c   : > { %5092 = vmatprep.mubr.msk.f32.mxu0 %vm669_vm1, %v5731_v51 }
 0x49f   : > { %5093 = vmatmul.mubr.msk.f32.gmra.mxu0 %vm669_vm1, %v5741_v52 }
 0x4a0   : > { %5111 = vmatprep.mubr.msk.f32.mxu0 %vm921_vm7, %v5748_v53 }
 0x539   : > { %v5069_v1 = vpop.f32.mrf.mxu0 }
 0x53a   : > { %v1602_v30 = vadd.f32 %v5069_v1, %v5872_v40 }
 0x53b   : > { %v1596_v6 = vpop.f32.mrf.mxu0 }
 0x53c   : > { %v1597_v43 = vadd.f32 %v1596_v6, %v5876_v45  ;;  %v1616_v46 = vmax.f32 %v1602_v30, 0.0 }
 0x53d   : > { %v5072_v38 = vpop.f32.mrf.mxu0 }
 0x53e   : > { %v1612_v8 = vadd.f32 %v5072_v38, %v5867_v18  ;;  %v1615_v47 = vmax.f32 %v1597_v43, 0.0 }
 0x53f   : > { %v1606_v28 = vpop.f32.mrf.mxu0 }
 0x540   : > { %v1618_v41 = vmax.f32 %v1612_v8, 0.0  ;;  %v1607_v42 = vadd.f32 %v1606_v28, %v5869_v24 }
 0x542   : > { %v1617_v44 = vmax.f32 %v1607_v42, 0.0  ;;  %5073 = vmatprep.subr.mxu1 %v1618_v41 }
 0x543   : > { %5074 = vmatpush3.msra.mxu1 %v1618_v41 }
 0x544   : > { %5075 = vmatprep.subr.mxu1 %v1617_v44 }
 0x545   : > { %5076 = vmatpush3.msra.mxu1 %v1617_v44 }
 0x546   : > { %5077 = vmatprep.subr.mxu1 %v1616_v46 }
 0x547   : > { %5078 = vmatpush3.msra.mxu1 %v1616_v46 }
 0x548   : > { %5079 = vmatprep.subr.mxu1 %v1615_v47 }
 0x549   : > { %5080 = vmatpush3.msra.mxu1 %v1615_v47 }
 0x54a   : > { %5082 = vmatmul.mubr.msk.f32.vlgmr.msra.gmra.mxu1 %vm921_vm7, %v5882_v54  ;;  %5095 = vmatprep.subr.msk.mxu1 %vm784_vm2, %v393_v5 }
 0x54b   : > { %5096 = vmatpush3.msk.msra.mxu1 %vm784_vm2, %v393_v5  ;;  %5084 = vmatprep.mubr.msk.f32.mxu1 %vm921_vm7, %v5887_v55  ;;  %v5998_v5 = vpop.permute.xlu1 %1147 }
 0x54c   : > { %v6004_v63 = vadd.f32 %v5914_v39, %v5998_v5  ;;  %v6020_v39 = vpop.permute.xlu0 %1152 }
 0x54d   : > { %6764 = vst [vmem:[#allocation7_spill] sm:$0xff] %v6020_v39  ;;  %v6033_v41 = vadd.f32 %v5920_v62, %v6020_v39 }
 0x54e   : > { %5085 = vmatmul.mubr.msk.f32.gmra.mxu1 %vm921_vm7, %v5900_v56 }
 0x54f   : > { %5097 = vmatprep.mubr.msk.f32.mxu1 %vm771_vm0, %v5616_v0  ;;  %v6018_v1 = vpop.permute.xlu1 %1157 }
 0x550   : > { %6763 = vst [vmem:[#allocation6_spill] sm:$0xff] %v6018_v1  ;;  %v6024_v38 = vadd.f32 %v5918_v61, %v6018_v1 }
 0x552   : > { %5098 = vmatmul.mubr.msk.f32.vlgmr.msra.gmra.mxu1 %vm771_vm0, %v5652_v7  ;;  %6765 = vst [vmem:[#allocation8_spill] sm:$0xff] %v6024_v38 }
 0x553   : > { %5100 = vmatprep.mubr.msk.f32.mxu1 %vm771_vm0, %v5666_v10 }
 0x556   : > { %5101 = vmatmul.mubr.msk.f32.gmra.mxu1 %vm771_vm0, %v5682_v14 }
 0x557   : > { %5125 = vmatprep.mubr.msk.f32.mxu1 %vm921_vm7, %v5788_v23 }
 0x55b   : > { %v5091_v16 = vpop.f32.mrf.mxu0 }
 0x55d   : > { %v1777_v30 = vpop.f32.mrf.mxu0 }
 0x55f   : > { %v5094_v46 = vpop.f32.mrf.mxu0 }
 0x561   : > { %v1787_v8 = vpop.f32.mrf.mxu0 }
 0x60a   : > { %v5083_v49 = vpop.f32.mrf.mxu1 }
 0x60b   : > { %v6007_v11 = vadd.f32 %v5083_v49, %v5998_v5 }
 0x60c   : > { %v1685_v12 = vpop.f32.mrf.mxu1 }
 0x60d   : > { %v6016_v26 = vadd.f32 %v1685_v12, %v6000_v48 }
 0x60e   : > { %v5086_v6 = vpop.f32.mrf.mxu1 }
 0x60f   : > { %6762 = vst [vmem:[#allocation5_spill] sm:$0xff] %v6016_v26  ;;  %v6029_v58 = vadd.f32 %v5086_v6, %v6018_v1 }
 0x610   : > { %v1695_v28 = vpop.f32.mrf.mxu1 }
 0x611   : > { %6766 = vst [vmem:[#allocation9_spill] sm:$0xff] %v6029_v58  ;;  %v6038_v43 = vadd.f32 %v1695_v28, %v6020_v39 }
 0x612   : > { %v5099_v61 = vpop.f32.mrf.mxu1 }
 0x613   : > { %v1871_v12 = vadd.f32 %v5099_v61, %v5091_v16 }
 0x614   : > { %v1865_v47 = vpop.f32.mrf.mxu1 }
 0x615   : > { %v1866_v1 = vadd.f32 %v1865_v47, %v1777_v30  ;;  %v1885_v42 = vadd.f32 %v1871_v12, %v5754_v60 }
 0x616   : > { %v5102_v49 = vpop.f32.mrf.mxu1 }
 0x617   : > { %v1881_v6 = vadd.f32 %v5102_v49, %v5094_v46  ;;  %v1884_v39 = vadd.f32 %v1866_v1, %v5761_v15  ;;  %v1889_v44 = vmax.f32 %v1885_v42, 0.0  ;;  %v1529_v42 = vmax.f32 %v5797_v29, %v5935_v59  ;;  %v6767_v29 = vld [vmem:[#allocation4_spill] sm:$0xff]  ;;  %v394_v59 = vld [vmem:[%s5641_s28 + $0xc] sm:$0xf] }
 0x618   : > { %v1875_v19 = vpop.f32.mrf.mxu1 }
 0x619   : > { %v1887_v62 = vadd.f32 %v1881_v6, %v5752_v57  ;;  %v1876_v26 = vadd.f32 %v1875_v19, %v1787_v8  ;;  %v1888_v16 = vmax.f32 %v1884_v39, 0.0 }
 0x61b   : > { %v1891_v58 = vmax.f32 %v1887_v62, 0.0  ;;  %v1886_v28 = vadd.f32 %v1876_v26, %v5757_v9  ;;  %v1527_v26 = vmax.f32 %v5807_v33, %v5943_v3  ;;  %v1528_v33 = vmax.f32 %v5800_v31, %v5938_v2  ;;  %v6768_v31 = vld [vmem:[#allocation2_spill] sm:$0xff]  ;;  %v6769_v2 = vld [vmem:[#allocation3_spill] sm:$0xff] }
 0x61c   : > { %v402_v47 = vsub.f32 %v394_v59, %v6769_v2 }
 0x61d   : > { %v1890_v38 = vmax.f32 %v1886_v28, 0.0  ;;  %5103 = vmatprep.subr.mxu0 %v1891_v58 }
 0x61e   : > { %5104 = vmatpush3.msra.mxu0 %v1891_v58  ;;  %v429_v49 = vsel %vm407_vm3, %v402_v47, 0.0 }
 0x61f   : > { %5105 = vmatprep.subr.mxu0 %v1890_v38  ;;  %v430_v12 = vrot.slane %v429_v49, 4 }
 0x620   : > { %5106 = vmatpush3.msra.mxu0 %v1890_v38  ;;  %v1526_v38 = vmax.f32 %v5814_v35, %v5948_v4 }
 0x621   : > { %5107 = vmatprep.subr.mxu0 %v1889_v44  ;;  %v431_v6 = vadd.f32 %v430_v12, %v429_v49 }
 0x622   : > { %5108 = vmatpush3.msra.mxu0 %v1889_v44 }
 0x623   : > { %5109 = vmatprep.subr.mxu0 %v1888_v16  ;;  %v432_v62 = vrot.slane %v431_v6, 2 }
 0x624   : > { %5110 = vmatpush3.msra.mxu0 %v1888_v16 }
 0x625   : > { %5112 = vmatmul.mubr.msk.f32.vlgmr.msra.gmra.mxu0 %vm921_vm7, %v5767_v20  ;;  %v433_v28 = vadd.f32 %v432_v62, %v431_v6 }
 0x626   : > { %5114 = vmatprep.mubr.msk.f32.mxu0 %vm921_vm7, %v5772_v21 }
 0x627   : > { %v434_v16 = vrot.slane %v433_v28, 1 }
 0x629   : > { %5115 = vmatmul.mubr.msk.f32.gmra.mxu0 %vm921_vm7, %v5781_v22 }
 0x62a   : > { %5139 = vmatprep.mubr.msk.f32.mxu0 %vm921_vm7, %v5853_v13 }
 0x6e5   : > { %v5113_v19 = vpop.f32.mrf.mxu0 }
 0x6e6   : > { %v1964_v1 = vadd.f32 %v5113_v19, %v5803_v32  ;;  %v435_v19 = vadd.f32 %v434_v16, %v433_v28 }
 0x6e7   : > { %v1958_v39 = vpop.f32.mrf.mxu0 }
 0x6e8   : > { %v6059_v8 = vmax.f32 %v1527_v26, %v1964_v1  ;;  %v1959_v58 = vadd.f32 %v1958_v39, %v5810_v34  ;;  %v468_v26 = vmul.f32 0.25, %v435_v19 }
 0x6e9   : > { %v5116_v30 = vpop.f32.mrf.mxu0 }
 0x6ea   : > { %v6064_v61 = vmax.f32 %v1526_v38, %v1959_v58  ;;  %v1974_v44 = vadd.f32 %v5116_v30, %v5792_v25 }
 0x6eb   : > { %v1968_v46 = vpop.f32.mrf.mxu0 }
 0x6ec   : > { %v6069_v3 = vmax.f32 %v1529_v42, %v1974_v44  ;;  %v1969_v35 = vadd.f32 %v1968_v46, %v5794_v27  ;;  %5117 = vmatprep.subr.mxu1 %v1974_v44 }
 0x6ed   : > { %5118 = vmatpush3.msra.mxu1 %v1974_v44 }
 0x6ee   : > { %v6072_v4 = vmax.f32 %v1528_v33, %v1969_v35  ;;  %5119 = vmatprep.subr.mxu1 %v1969_v35 }
 0x6ef   : > { %5120 = vmatpush3.msra.mxu1 %v1969_v35 }
 0x6f0   : > { %5121 = vmatprep.subr.mxu1 %v1964_v1 }
 0x6f1   : > { %5122 = vmatpush3.msra.mxu1 %v1964_v1  ;;  %v476_v1 = vsub.f32 %v402_v47, %v468_v26 }
 0x6f2   : > { %5123 = vmatprep.subr.mxu1 %v1959_v58 }
 0x6f3   : > { %5124 = vmatpush3.msra.mxu1 %v1959_v58  ;;  %v484_v39 = vmul.f32 %v476_v1, %v476_v1 }
 0x6f4   : > { %5126 = vmatmul.mubr.msk.f32.vlgmr.msra.gmra.mxu1 %vm921_vm7, %v5821_v36 }
 0x6f5   : > { %5128 = vmatprep.mubr.msk.f32.mxu1 %vm921_vm7, %v5827_v37  ;;  %v510_v38 = vsel %vm407_vm3, %v484_v39, 0.0 }
 0x6f6   : > { %v511_v58 = vrot.slane %v510_v38, 4 }
 0x6f8   : > { %5129 = vmatmul.mubr.msk.f32.gmra.mxu1 %vm921_vm7, %v6767_v29  ;;  %v512_v30 = vadd.f32 %v511_v58, %v510_v38 }
 0x6f9   : > { %5147 = vmatprep.mubr.msk.f32.mxu1 %vm669_vm1, %v6768_v31 }
 0x6fa   : > { %v513_v42 = vrot.slane %v512_v30, 2 }
 0x6fc   : > { %v514_v44 = vadd.f32 %v513_v42, %v512_v30 }
 0x6fe   : > { %v515_v46 = vrot.slane %v514_v44, 1 }
 0x700   : > { %v516_v33 = vadd.f32 %v515_v46, %v514_v44 }
 0x702   : > { %v548_v35 = vmul.f32 0.25, %v516_v33 }
 0x704   : > { %5474 = vrsqrt.f32 %v548_v35  ;;  %vm576_vm12 = vcmp.eq.f32.partialorder %v548_v35, inf  ;;  %v579_v49 = vand.u32 2147483648, %v548_v35  ;;  %vm578_vm13 = vcmp.eq.f32.partialorder %v548_v35, 0.0 }
 0x711   : > { %v5475_v31 = vpop.eup %5474 }
 0x712   : > { %v575_v2 = vmul.f32 %v5475_v31, %v548_v35 }
 0x714   : > { %v577_v12 = vsel %vm576_vm12, %v548_v35, %v575_v2  ;;  %v6773_v2 = vld [vmem:[#allocation6_spill] sm:$0xff] }
 0x715   : > { %v580_v6 = vsel %vm578_vm13, %v579_v49, %v577_v12 }
 0x716   : > { %v612_v62 = vadd.f32 1e-06, %v580_v6  ;;  %v6774_v6 = vld [vmem:[#allocation8_spill] sm:$0xff] }
 0x718   : > { %5476 = vrcp.f32 %v612_v62  ;;  %v6775_v62 = vld [vmem:[#allocation9_spill] sm:$0xff] }
 0x725   : > { %v5477_v28 = vpop.eup %5476 }
 0x726   : > { %v628_v16 = vmul.f32 %v5477_v28, %v402_v47  ;;  %v6776_v28 = vmax.f32 %v6774_v6, %v6775_v62 }
 0x728   : > { %5145 = vmatprep.subr.msk.mxu1 %vm682_vm6, %v628_v16 }
 0x729   : > { %5146 = vmatpush3.msk.msra.mxu1 %vm682_vm6, %v628_v16 }
 0x72a   : > { %5148 = vmatmul.mubr.msk.f32.vlgmr.msra.gmra.mxu1 %vm669_vm1, %v5725_v50 }
 0x72b   : > { %5150 = vmatprep.mubr.msk.f32.mxu1 %vm669_vm1, %v5731_v51 }
 0x72e   : > { %5151 = vmatmul.mubr.msk.f32.gmra.mxu1 %vm669_vm1, %v5741_v52 }
 0x72f   : > { %5169 = vmatprep.mubr.msk.f32.mxu1 %vm921_vm7, %v5748_v53 }
 0x7b4   : > { %v5127_v19 = vpop.f32.mrf.mxu1 }
 0x7b5   : > { %v2053_v38 = vadd.f32 %v5127_v19, %v5872_v40 }
 0x7b6   : > { %v2047_v26 = vpop.f32.mrf.mxu1 }
 0x7b7   : > { %v2048_v30 = vadd.f32 %v2047_v26, %v5876_v45  ;;  %v2067_v52 = vmax.f32 %v2053_v38, 0.0  ;;  %v6778_v26 = vmax.f32 %v6033_v41, %v6038_v43 }
 0x7b8   : > { %v5130_v1 = vpop.f32.mrf.mxu1 }
 0x7b9   : > { %v2063_v47 = vadd.f32 %v5130_v1, %v5867_v18  ;;  %v2066_v53 = vmax.f32 %v2048_v30, 0.0 }
 0x7ba   : > { %v2057_v39 = vpop.f32.mrf.mxu1 }
 0x7bb   : > { %v2069_v58 = vmax.f32 %v2063_v47, 0.0  ;;  %v2058_v50 = vadd.f32 %v2057_v39, %v5869_v24 }
 0x7bd   : > { %v2068_v51 = vmax.f32 %v2058_v50, 0.0  ;;  %5131 = vmatprep.subr.mxu0 %v2069_v58 }
 0x7be   : > { %5132 = vmatpush3.msra.mxu0 %v2069_v58 }
 0x7bf   : > { %5133 = vmatprep.subr.mxu0 %v2068_v51 }
 0x7c0   : > { %5134 = vmatpush3.msra.mxu0 %v2068_v51 }
 0x7c1   : > { %5135 = vmatprep.subr.mxu0 %v2067_v52 }
 0x7c2   : > { %5136 = vmatpush3.msra.mxu0 %v2067_v52 }
 0x7c3   : > { %5137 = vmatprep.subr.mxu0 %v2066_v53 }
 0x7c4   : > { %5138 = vmatpush3.msra.mxu0 %v2066_v53 }
 0x7c5   : > { %5140 = vmatmul.mubr.msk.f32.vlgmr.msra.gmra.mxu0 %vm921_vm7, %v5882_v54  ;;  %5153 = vmatprep.subr.msk.mxu0 %vm784_vm2, %v394_v59 }
 0x7c6   : > { %5154 = vmatpush3.msk.msra.mxu0 %vm784_vm2, %v394_v59  ;;  %5142 = vmatprep.mubr.msk.f32.mxu0 %vm921_vm7, %v5887_v55 }
 0x7c9   : > { %5143 = vmatmul.mubr.msk.f32.gmra.mxu0 %vm921_vm7, %v5900_v56 }
 0x7ca   : > { %5155 = vmatprep.mubr.msk.f32.mxu0 %vm771_vm0, %v5616_v0  ;;  %v6770_v0 = vmax.f32 %v6004_v63, %v6007_v11  ;;  %v6777_v63 = vld [vmem:[#allocation7_spill] sm:$0xff] }
 0x7cd   : > { %5156 = vmatmul.mubr.msk.f32.vlgmr.msra.gmra.mxu0 %vm771_vm0, %v5652_v7 }
 0x7ce   : > { %5158 = vmatprep.mubr.msk.f32.mxu0 %vm771_vm0, %v5666_v10  ;;  %v6771_v10 = vld [vmem:[#allocation5_spill] sm:$0xff] }
 0x7cf   : > { %v6772_v31 = vmax.f32 %v6011_v17, %v6771_v10 }
 0x7d1   : > { %5159 = vmatmul.mubr.msk.f32.gmra.mxu0 %vm771_vm0, %v5682_v14 }
 0x7d2   : > { %5183 = vmatprep.mubr.msk.f32.mxu0 %vm921_vm7, %v5788_v23 }
 0x7ea   : > { %v5149_v46 = vpop.f32.mrf.mxu1 }
 0x7ec   : > { %v2228_v12 = vpop.f32.mrf.mxu1 }
 0x7ee   : > { %v5152_v17 = vpop.f32.mrf.mxu1 }
 0x7f0   : > { %v2238_v50 = vpop.f32.mrf.mxu1 }
 0x885   : > { %v5141_v59 = vpop.f32.mrf.mxu0 }
 0x886   : > { %v2142_v42 = vadd.f32 %v5141_v59, %v5998_v5 }
 0x887   : > { %v2136_v44 = vpop.f32.mrf.mxu0 }
 0x888   : > { %v6122_v33 = vmax.f32 %v6770_v0, %v2142_v42  ;;  %v2137_v7 = vadd.f32 %v2136_v44, %v6000_v48 }
 0x889   : > { %v5144_v35 = vpop.f32.mrf.mxu0 }
 0x88a   : > { %v6128_v14 = vmax.f32 %v6772_v31, %v2137_v7  ;;  %v2152_v23 = vadd.f32 %v5144_v35, %v6773_v2 }
 0x88b   : > { %v2146_v49 = vpop.f32.mrf.mxu0 }
 0x88c   : > { %v6134_v16 = vmax.f32 %v6776_v28, %v2152_v23  ;;  %v2147_v11 = vadd.f32 %v2146_v49, %v6777_v63  ;;  %v6191_v28 = vld [vmem:[%s6726_s2] sm:$0xff] }
 0x88d   : > { %v5157_v19 = vpop.f32.mrf.mxu0  ;;  %6779 = vst [vmem:[#allocation4_spill] sm:$0xff] %v6191_v28 }
 0x88e   : > { %v6140_v1 = vmax.f32 %v6778_v26, %v2147_v11  ;;  %v2322_v38 = vadd.f32 %v5157_v19, %v5149_v46  ;;  %v6196_v11 = vld [vmem:[%s5641_s28 + $0x10] sm:$0xf]  ;;  %v6199_v19 = vld [vmem:[%s5641_s28] sm:$0xf] }
 0x88f   : > { %v2316_v47 = vpop.f32.mrf.mxu0  ;;  %6780 = vst [vmem:[#allocation2_spill] sm:$0xff] %v6199_v19 }
 0x890   : > { %v2317_v51 = vadd.f32 %v2316_v47, %v2228_v12  ;;  %v2336_v59 = vadd.f32 %v2322_v38, %v5754_v60 }
 0x891   : > { %v5160_v39 = vpop.f32.mrf.mxu0 }
 0x892   : > { %v2332_v58 = vadd.f32 %v5160_v39, %v5152_v17  ;;  %v2335_v41 = vadd.f32 %v2317_v51, %v5761_v15  ;;  %v2340_v0 = vmax.f32 %v2336_v59, 0.0 }
 0x893   : > { %v2326_v30 = vpop.f32.mrf.mxu0 }
 0x894   : > { %v2338_v52 = vadd.f32 %v2332_v58, %v5752_v57  ;;  %v2327_v53 = vadd.f32 %v2326_v30, %v2238_v50  ;;  %v2339_v46 = vmax.f32 %v2335_v41, 0.0 }
 0x896   : > { %v2342_v42 = vmax.f32 %v2338_v52, 0.0  ;;  %v2337_v44 = vadd.f32 %v2327_v53, %v5757_v9 }
 0x898   : > { %v2341_v43 = vmax.f32 %v2337_v44, 0.0  ;;  %5161 = vmatprep.subr.mxu1 %v2342_v42 }
 0x899   : > { %5162 = vmatpush3.msra.mxu1 %v2342_v42 }
 0x89a   : > { %5163 = vmatprep.subr.mxu1 %v2341_v43 }
 0x89b   : > { %5164 = vmatpush3.msra.mxu1 %v2341_v43 }
 0x89c   : > { %5165 = vmatprep.subr.mxu1 %v2340_v0 }
 0x89d   : > { %5166 = vmatpush3.msra.mxu1 %v2340_v0 }
 0x89e   : > { %5167 = vmatprep.subr.mxu1 %v2339_v46 }
 0x89f   : > { %5168 = vmatpush3.msra.mxu1 %v2339_v46 }
 0x8a0   : > { %5170 = vmatmul.mubr.msk.f32.vlgmr.msra.gmra.mxu1 %vm921_vm7, %v5767_v20 }
 0x8a1   : > { %5172 = vmatprep.mubr.msk.f32.mxu1 %vm921_vm7, %v5772_v21 }
 0x8a4   : > { %5173 = vmatmul.mubr.msk.f32.gmra.mxu1 %vm921_vm7, %v5781_v22 }
 0x8a5   : > { %5197 = vmatprep.mubr.msk.f32.mxu1 %vm921_vm7, %v5853_v13 }
 0x960   : > { %v5171_v7 = vpop.f32.mrf.mxu1 }
 0x961   : > { %v6155_v35 = vadd.f32 %v5171_v7, %v5803_v32 }
 0x962   : > { %v2409_v10 = vpop.f32.mrf.mxu1 }
 0x963   : > { %v2429_v31 = vmax.f32 %v6059_v8, %v6155_v35  ;;  %v6160_v23 = vadd.f32 %v2409_v10, %v5810_v34 }
 0x964   : > { %v5174_v20 = vpop.f32.mrf.mxu1 }
 0x965   : > { %v6165_v22 = vadd.f32 %v5174_v20, %v5792_v25 }
 0x966   : > { %v2419_v49 = vpop.f32.mrf.mxu1 }
 0x967   : > { %v6170_v6 = vadd.f32 %v2419_v49, %v5794_v27  ;;  %5175 = vmatprep.subr.mxu0 %v6165_v22 }
 0x968   : > { %5176 = vmatpush3.msra.mxu0 %v6165_v22 }
 0x969   : > { %5177 = vmatprep.subr.mxu0 %v6170_v6 }
 0x96a   : > { %5178 = vmatpush3.msra.mxu0 %v6170_v6 }
 0x96b   : > { %5179 = vmatprep.subr.mxu0 %v6155_v35 }
 0x96c   : > { %5180 = vmatpush3.msra.mxu0 %v6155_v35  ;;  %v6783_v35 = vmax.f32 %v6072_v4, %v6170_v6  ;;  %v6372_v4 = vld [vmem:[%s6730_s6 + $0x18] sm:$0xff] }
 0x96d   : > { %5181 = vmatprep.subr.mxu0 %v6160_v23  ;;  %6787 = vst [vmem:[#allocation8_spill] sm:$0xff] %v6372_v4 }
 0x96e   : > { %5182 = vmatpush3.msra.mxu0 %v6160_v23 }
 0x96f   : > { %5184 = vmatmul.mubr.msk.f32.vlgmr.msra.gmra.mxu0 %vm921_vm7, %v5821_v36  ;;  %v403_v36 = vsub.f32 %v6196_v11, %v6199_v19 }
 0x970   : > { %5186 = vmatprep.mubr.msk.f32.mxu0 %vm921_vm7, %v5827_v37 }
 0x971   : > { %v436_v37 = vsel %vm407_vm3, %v403_v36, 0.0 }
 0x972   : > { %v437_v26 = vrot.slane %v436_v37, 4 }
 0x973   : > { %5187 = vmatmul.mubr.msk.f32.gmra.mxu0 %vm921_vm7, %v6767_v29 }
 0x974   : > { %5205 = vmatprep.mubr.msk.f32.mxu0 %vm669_vm1, %v6191_v28  ;;  %v438_v17 = vadd.f32 %v437_v26, %v436_v37 }
 0x976   : > { %v439_v29 = vrot.slane %v438_v17, 2 }
 0x978   : > { %v440_v47 = vadd.f32 %v439_v29, %v438_v17  ;;  %v6210_v17 = vld [vmem:[%s6726_s2 + $0x8] sm:$0xff]  ;;  %v6217_v29 = vld [vmem:[%s6726_s2 + $0x10] sm:$0xff] }
 0x97a   : > { %v441_v39 = vrot.slane %v440_v47, 1 }
 0x97c   : > { %v442_v38 = vadd.f32 %v441_v39, %v440_v47  ;;  %v6231_v47 = vld [vmem:[%s6728_s4] sm:$0xff] }
 0x97e   : > { %v469_v58 = vmul.f32 0.25, %v442_v38 }
 0x980   : > { %v477_v50 = vsub.f32 %v403_v36, %v469_v58 }
 0x982   : > { %v485_v30 = vmul.f32 %v477_v50, %v477_v50 }
 0x984   : > { %v517_v51 = vsel %vm407_vm3, %v485_v30, 0.0 }
 0x985   : > { %v518_v52 = vrot.slane %v517_v51, 4 }
 0x987   : > { %v519_v53 = vadd.f32 %v518_v52, %v517_v51 }
 0x989   : > { %v520_v59 = vrot.slane %v519_v53, 2 }
 0x98b   : > { %v521_v42 = vadd.f32 %v520_v59, %v519_v53 }
 0x98d   : > { %v522_v44 = vrot.slane %v521_v42, 1 }
 0x98f   : > { %v523_v41 = vadd.f32 %v522_v44, %v521_v42 }
 0x991   : > { %v549_v43 = vmul.f32 0.25, %v523_v41 }
 0x993   : > { %5478 = vrsqrt.f32 %v549_v43  ;;  %vm583_vm14 = vcmp.eq.f32.partialorder %v549_v43, inf  ;;  %v586_v7 = vand.u32 2147483648, %v549_v43  ;;  %vm585_vm15 = vcmp.eq.f32.partialorder %v549_v43, 0.0 }
 0x9a0   : > { %v5479_v0 = vpop.eup %5478 }
 0x9a1   : > { %v582_v46 = vmul.f32 %v5479_v0, %v549_v43 }
 0x9a3   : > { %v584_v10 = vsel %vm583_vm14, %v549_v43, %v582_v46  ;;  %v6252_v43 = vld [vmem:[%s6725_s1] sm:$0xff] }
 0x9a4   : > { %v587_v20 = vsel %vm585_vm15, %v586_v7, %v584_v10 }
 0x9a5   : > { %v613_v49 = vadd.f32 1e-06, %v587_v20 }
 0x9a7   : > { %5480 = vrcp.f32 %v613_v49 }
 0x9b4   : > { %v5481_v37 = vpop.eup %5480 }
 0x9b5   : > { %v629_v26 = vmul.f32 %v5481_v37, %v403_v36  ;;  %v6224_v36 = vld [vmem:[%s6726_s2 + $0x18] sm:$0xff] }
 0x9b7   : > { %5203 = vmatprep.subr.msk.mxu0 %vm682_vm6, %v629_v26 }
 0x9b8   : > { %5204 = vmatpush3.msk.msra.mxu0 %vm682_vm6, %v629_v26 }
 0x9b9   : > { %5206 = vmatmul.mubr.msk.f32.vlgmr.msra.gmra.mxu0 %vm669_vm1, %v6210_v17 }
 0x9ba   : > { %5208 = vmatprep.mubr.msk.f32.mxu0 %vm669_vm1, %v6217_v29 }
 0x9bd   : > { %5209 = vmatmul.mubr.msk.f32.gmra.mxu0 %vm669_vm1, %v6224_v36 }
 0x9be   : > { %5227 = vmatprep.mubr.msk.f32.mxu0 %vm921_vm7, %v6231_v47 }
 0xa2f   : > { %v5185_v39 = vpop.f32.mrf.mxu0 }
 0xa30   : > { %v2504_v51 = vadd.f32 %v5185_v39, %v5872_v40 }
 0xa31   : > { %v2498_v38 = vpop.f32.mrf.mxu0 }
 0xa32   : > { %v2499_v59 = vadd.f32 %v2498_v38, %v5876_v45  ;;  %v2518_v44 = vmax.f32 %v2504_v51, 0.0 }
 0xa33   : > { %v5188_v58 = vpop.f32.mrf.mxu0 }
 0xa34   : > { %v2514_v50 = vadd.f32 %v5188_v58, %v5867_v18  ;;  %v2517_v41 = vmax.f32 %v2499_v59, 0.0 }
 0xa35   : > { %v2508_v30 = vpop.f32.mrf.mxu0 }
 0xa36   : > { %v2520_v52 = vmax.f32 %v2514_v50, 0.0  ;;  %v2509_v53 = vadd.f32 %v2508_v30, %v5869_v24 }
 0xa38   : > { %v2519_v42 = vmax.f32 %v2509_v53, 0.0  ;;  %5189 = vmatprep.subr.mxu1 %v2520_v52 }
 0xa39   : > { %5190 = vmatpush3.msra.mxu1 %v2520_v52 }
 0xa3a   : > { %5191 = vmatprep.subr.mxu1 %v2519_v42 }
 0xa3b   : > { %5192 = vmatpush3.msra.mxu1 %v2519_v42 }
 0xa3c   : > { %5193 = vmatprep.subr.mxu1 %v2518_v44 }
 0xa3d   : > { %5194 = vmatpush3.msra.mxu1 %v2518_v44 }
 0xa3e   : > { %5195 = vmatprep.subr.mxu1 %v2517_v41 }
 0xa3f   : > { %5196 = vmatpush3.msra.mxu1 %v2517_v41 }
 0xa40   : > { %5198 = vmatmul.mubr.msk.f32.vlgmr.msra.gmra.mxu1 %vm921_vm7, %v5882_v54  ;;  %5211 = vmatprep.subr.msk.mxu1 %vm784_vm2, %v6196_v11  ;;  %v6259_v54 = vld [vmem:[%s6725_s1 + $0x8] sm:$0xff] }
 0xa41   : > { %5212 = vmatpush3.msk.msra.mxu1 %vm784_vm2, %v6196_v11  ;;  %5200 = vmatprep.mubr.msk.f32.mxu1 %vm921_vm7, %v5887_v55  ;;  %v6266_v55 = vld [vmem:[%s6725_s1 + $0x10] sm:$0xff]  ;;  %v6280_v11 = vld [vmem:[%s6730_s6] sm:$0xff] }
 0xa44   : > { %5201 = vmatmul.mubr.msk.f32.gmra.mxu1 %vm921_vm7, %v5900_v56  ;;  %v6273_v56 = vld [vmem:[%s6725_s1 + $0x18] sm:$0xff] }
 0xa45   : > { %5213 = vmatprep.mubr.msk.f32.mxu1 %vm771_vm0, %v6252_v43 }
 0xa48   : > { %5214 = vmatmul.mubr.msk.f32.vlgmr.msra.gmra.mxu1 %vm771_vm0, %v6259_v54 }
 0xa49   : > { %5216 = vmatprep.mubr.msk.f32.mxu1 %vm771_vm0, %v6266_v55 }
 0xa4c   : > { %5217 = vmatmul.mubr.msk.f32.gmra.mxu1 %vm771_vm0, %v6273_v56 }
 0xa4d   : > { %5241 = vmatprep.mubr.msk.f32.mxu1 %vm921_vm7, %v6280_v11 }
 0xa79   : > { %v5207_v10 = vpop.f32.mrf.mxu0 }
 0xa7b   : > { %v2679_v58 = vpop.f32.mrf.mxu0 }
 0xa7d   : > { %v5210_v53 = vpop.f32.mrf.mxu0 }
 0xb00   : > { %v5199_v0 = vpop.f32.mrf.mxu1 }
 0xb01   : > { %v6285_v46 = vadd.f32 %v5199_v0, %v5998_v5  ;;  %v2689_v0 = vpop.f32.mrf.mxu0 }
 0xb02   : > { %v2587_v7 = vpop.f32.mrf.mxu1 }
 0xb03   : > { %v6290_v49 = vadd.f32 %v2587_v7, %v6000_v48 }
 0xb04   : > { %v5202_v37 = vpop.f32.mrf.mxu1 }
 0xb05   : > { %v6295_v39 = vadd.f32 %v5202_v37, %v6773_v2 }
 0xb06   : > { %v2597_v38 = vpop.f32.mrf.mxu1 }
 0xb07   : > { %v6300_v30 = vadd.f32 %v2597_v38, %v6777_v63 }
 0xb08   : > { %v5215_v51 = vpop.f32.mrf.mxu1 }
 0xb09   : > { %v2773_v44 = vadd.f32 %v5215_v51, %v5207_v10 }
 0xb0a   : > { %v2767_v59 = vpop.f32.mrf.mxu1 }
 0xb0b   : > { %v2768_v37 = vadd.f32 %v2767_v59, %v2679_v58  ;;  %v2787_v50 = vadd.f32 %v2773_v44, %v5754_v60  ;;  %v6311_v58 = vld [vmem:[%s6728_s4 + $0x8] sm:$0xff]  ;;  %v6782_v44 = vmax.f32 %v6069_v3, %v6165_v22  ;;  %v6365_v3 = vld [vmem:[%s6730_s6 + $0x10] sm:$0xff] }
 0xb0c   : > { %v5218_v42 = vpop.f32.mrf.mxu1  ;;  %6786 = vst [vmem:[#allocation6_spill] sm:$0xff] %v6365_v3 }
 0xb0d   : > { %v2783_v41 = vadd.f32 %v5218_v42, %v5210_v53  ;;  %v2786_v12 = vadd.f32 %v2768_v37, %v5761_v15  ;;  %v2791_v52 = vmax.f32 %v2787_v50, 0.0  ;;  %v6781_v53 = vmax.f32 %v6064_v61, %v6160_v23  ;;  %v6358_v61 = vld [vmem:[%s6730_s6 + $0x8] sm:$0xff]  ;;  %v396_v23 = vld [vmem:[%s5641_s28 + $0x14] sm:$0xf] }
 0xb0e   : > { %v2777_v7 = vpop.f32.mrf.mxu1  ;;  %6785 = vst [vmem:[#allocation5_spill] sm:$0xff] %v6358_v61  ;;  %v404_v22 = vsub.f32 %v396_v23, %v6199_v19 }
 0xb0f   : > { %v2789_v26 = vadd.f32 %v2783_v41, %v5752_v57  ;;  %v2778_v20 = vadd.f32 %v2777_v7, %v2689_v0  ;;  %v2790_v10 = vmax.f32 %v2786_v12, 0.0 }
 0xb10   : > { %v443_v6 = vsel %vm407_vm3, %v404_v22, 0.0 }
 0xb11   : > { %v2793_v62 = vmax.f32 %v2789_v26, 0.0  ;;  %v2788_v38 = vadd.f32 %v2778_v20, %v5757_v9  ;;  %v444_v0 = vrot.slane %v443_v6, 4 }
 0xb13   : > { %v2792_v21 = vmax.f32 %v2788_v38, 0.0  ;;  %5219 = vmatprep.subr.mxu0 %v2793_v62  ;;  %v445_v7 = vadd.f32 %v444_v0, %v443_v6 }
 0xb14   : > { %5220 = vmatpush3.msra.mxu0 %v2793_v62  ;;  %v6318_v62 = vld [vmem:[%s6728_s4 + $0x10] sm:$0xff] }
 0xb15   : > { %5221 = vmatprep.subr.mxu0 %v2792_v21  ;;  %v446_v37 = vrot.slane %v445_v7, 2 }
 0xb16   : > { %5222 = vmatpush3.msra.mxu0 %v2792_v21  ;;  %v6325_v21 = vld [vmem:[%s6728_s4 + $0x18] sm:$0xff] }
 0xb17   : > { %5223 = vmatprep.subr.mxu0 %v2791_v52  ;;  %v447_v38 = vadd.f32 %v446_v37, %v445_v7 }
 0xb18   : > { %5224 = vmatpush3.msra.mxu0 %v2791_v52 }
 0xb19   : > { %5225 = vmatprep.subr.mxu0 %v2790_v10 }
 0xb1a   : > { %5226 = vmatpush3.msra.mxu0 %v2790_v10  ;;  %v448_v10 = vrot.slane %v447_v38, 1 }
 0xb1b   : > { %5228 = vmatmul.mubr.msk.f32.vlgmr.msra.gmra.mxu0 %vm921_vm7, %v6311_v58 }
 0xb1c   : > { %5230 = vmatprep.mubr.msk.f32.mxu0 %vm921_vm7, %v6318_v62 }
 0xb1f   : > { %5231 = vmatmul.mubr.msk.f32.gmra.mxu0 %vm921_vm7, %v6325_v21 }
 0xb20   : > { %5255 = vmatprep.mubr.msk.f32.mxu0 %vm921_vm7, %v5853_v13 }
 0xbdb   : > { %v5229_v12 = vpop.f32.mrf.mxu0 }
 0xbdc   : > { %v2866_v20 = vadd.f32 %v5229_v12, %v5803_v32  ;;  %v449_v12 = vadd.f32 %v448_v10, %v447_v38 }
 0xbdd   : > { %v2860_v26 = vpop.f32.mrf.mxu0 }
 0xbde   : > { %v6335_v50 = vmax.f32 %v2429_v31, %v2866_v20  ;;  %v2861_v51 = vadd.f32 %v2860_v26, %v5810_v34 }
 0xbdf   : > { %v5232_v52 = vpop.f32.mrf.mxu0 }
 0xbe0   : > { %v6341_v59 = vmax.f32 %v6781_v53, %v2861_v51  ;;  %v2876_v42 = vadd.f32 %v5232_v52, %v5792_v25 }
 0xbe1   : > { %v2870_v13 = vpop.f32.mrf.mxu0 }
 0xbe2   : > { %v6347_v41 = vmax.f32 %v6782_v44, %v2876_v42  ;;  %v2871_v8 = vadd.f32 %v2870_v13, %v5794_v27  ;;  %5233 = vmatprep.subr.mxu1 %v2876_v42 }
 0xbe3   : > { %5234 = vmatpush3.msra.mxu1 %v2876_v42 }
 0xbe4   : > { %v6353_v31 = vmax.f32 %v6783_v35, %v2871_v8  ;;  %5235 = vmatprep.subr.mxu1 %v2871_v8 }
 0xbe5   : > { %5236 = vmatpush3.msra.mxu1 %v2871_v8 }
 0xbe6   : > { %6784 = vst [vmem:[#allocation3_spill] sm:$0xff] %v6353_v31  ;;  %5237 = vmatprep.subr.mxu1 %v2866_v20 }
 0xbe7   : > { %5238 = vmatpush3.msra.mxu1 %v2866_v20  ;;  %v470_v20 = vmul.f32 0.25, %v449_v12 }
 0xbe8   : > { %5239 = vmatprep.subr.mxu1 %v2861_v51 }
 0xbe9   : > { %5240 = vmatpush3.msra.mxu1 %v2861_v51  ;;  %v478_v26 = vsub.f32 %v404_v22, %v470_v20 }
 0xbea   : > { %5242 = vmatmul.mubr.msk.f32.vlgmr.msra.gmra.mxu1 %vm921_vm7, %v6358_v61 }
 0xbeb   : > { %5244 = vmatprep.mubr.msk.f32.mxu1 %vm921_vm7, %v6365_v3  ;;  %v486_v51 = vmul.f32 %v478_v26, %v478_v26 }
 0xbed   : > { %v524_v52 = vsel %vm407_vm3, %v486_v51, 0.0 }
 0xbee   : > { %5245 = vmatmul.mubr.msk.f32.gmra.mxu1 %vm921_vm7, %v6372_v4  ;;  %v525_v53 = vrot.slane %v524_v52, 4 }
 0xbef   : > { %5263 = vmatprep.mubr.msk.f32.mxu1 %vm669_vm1, %v6191_v28 }
 0xbf0   : > { %v526_v42 = vadd.f32 %v525_v53, %v524_v52 }
 0xbf2   : > { %v527_v13 = vrot.slane %v526_v42, 2 }
 0xbf4   : > { %v528_v44 = vadd.f32 %v527_v13, %v526_v42 }
 0xbf6   : > { %v529_v8 = vrot.slane %v528_v44, 1 }
 0xbf8   : > { %v530_v35 = vadd.f32 %v529_v8, %v528_v44  ;;  %v6399_v44 = vld [vmem:[%s6732_s8 + $0x8] sm:$0xff]  ;;  %v6408_v8 = vld [vmem:[%s6732_s8 + $0x10] sm:$0xff] }
 0xbfa   : > { %v550_v19 = vmul.f32 0.25, %v530_v35  ;;  %v6415_v35 = vld [vmem:[%s6732_s8 + $0x18] sm:$0xff] }
 0xbfc   : > { %5482 = vrsqrt.f32 %v550_v19  ;;  %vm590_vm4 = vcmp.eq.f32.partialorder %v550_v19, inf  ;;  %v593_v6 = vand.u32 2147483648, %v550_v19  ;;  %vm592_vm5 = vcmp.eq.f32.partialorder %v550_v19, 0.0 }
 0xc09   : > { %v5483_v28 = vpop.eup %5482 }
 0xc0a   : > { %v589_v4 = vmul.f32 %v5483_v28, %v550_v19 }
 0xc0c   : > { %v591_v0 = vsel %vm590_vm4, %v550_v19, %v589_v4 }
 0xc0d   : > { %v594_v7 = vsel %vm592_vm5, %v593_v6, %v591_v0 }
 0xc0e   : > { %v614_v37 = vadd.f32 1e-06, %v594_v7 }
 0xc10   : > { %5484 = vrcp.f32 %v614_v37  ;;  %v6788_v37 = vmax.f32 %v6122_v33, %v6285_v46 }
 0xc1d   : > { %v5485_v38 = vpop.eup %5484 }
 0xc1e   : > { %v630_v10 = vmul.f32 %v5485_v38, %v404_v22 }
 0xc20   : > { %5261 = vmatprep.subr.msk.mxu1 %vm682_vm6, %v630_v10 }
 0xc21   : > { %5262 = vmatpush3.msk.msra.mxu1 %vm682_vm6, %v630_v10 }
 0xc22   : > { %5264 = vmatmul.mubr.msk.f32.vlgmr.msra.gmra.mxu1 %vm669_vm1, %v6210_v17 }
 0xc23   : > { %5266 = vmatprep.mubr.msk.f32.mxu1 %vm669_vm1, %v6217_v29 }
 0xc26   : > { %5267 = vmatmul.mubr.msk.f32.gmra.mxu1 %vm669_vm1, %v6224_v36 }
 0xc27   : > { %5285 = vmatprep.mubr.msk.f32.mxu1 %vm921_vm7, %v6231_v47 }
 0xcaa   : > { %v5243_v28 = vpop.f32.mrf.mxu1 }
 0xcab   : > { %v2955_v20 = vadd.f32 %v5243_v28, %v5872_v40 }
 0xcac   : > { %v2949_v19 = vpop.f32.mrf.mxu1 }
 0xcad   : > { %v2950_v52 = vadd.f32 %v2949_v19, %v5876_v45  ;;  %v2969_v42 = vmax.f32 %v2955_v20, 0.0  ;;  %v6789_v19 = vmax.f32 %v6128_v14, %v6290_v49 }
 0xcae   : > { %v5246_v4 = vpop.f32.mrf.mxu1 }
 0xcaf   : > { %v2965_v22 = vadd.f32 %v5246_v4, %v5867_v18  ;;  %v2968_v13 = vmax.f32 %v2950_v52, 0.0  ;;  %v6791_v52 = vmax.f32 %v6140_v1, %v6300_v30 }
 0xcb0   : > { %v2959_v12 = vpop.f32.mrf.mxu1 }
 0xcb1   : > { %v2971_v26 = vmax.f32 %v2965_v22, 0.0  ;;  %v2960_v51 = vadd.f32 %v2959_v12, %v5869_v24 }
 0xcb3   : > { %v2970_v53 = vmax.f32 %v2960_v51, 0.0  ;;  %5247 = vmatprep.subr.mxu0 %v2971_v26 }
 0xcb4   : > { %5248 = vmatpush3.msra.mxu0 %v2971_v26  ;;  %v6790_v26 = vmax.f32 %v6134_v16, %v6295_v39 }
 0xcb5   : > { %5249 = vmatprep.subr.mxu0 %v2970_v53 }
 0xcb6   : > { %5250 = vmatpush3.msra.mxu0 %v2970_v53 }
 0xcb7   : > { %5251 = vmatprep.subr.mxu0 %v2969_v42 }
 0xcb8   : > { %5252 = vmatpush3.msra.mxu0 %v2969_v42 }
 0xcb9   : > { %5253 = vmatprep.subr.mxu0 %v2968_v13 }
 0xcba   : > { %5254 = vmatpush3.msra.mxu0 %v2968_v13 }
 0xcbb   : > { %5256 = vmatmul.mubr.msk.f32.vlgmr.msra.gmra.mxu0 %vm921_vm7, %v6399_v44  ;;  %5269 = vmatprep.subr.msk.mxu0 %vm784_vm2, %v396_v23 }
 0xcbc   : > { %5270 = vmatpush3.msk.msra.mxu0 %vm784_vm2, %v396_v23  ;;  %5258 = vmatprep.mubr.msk.f32.mxu0 %vm921_vm7, %v6408_v8 }
 0xcbf   : > { %5259 = vmatmul.mubr.msk.f32.gmra.mxu0 %vm921_vm7, %v6415_v35 }
 0xcc0   : > { %5271 = vmatprep.mubr.msk.f32.mxu0 %vm771_vm0, %v6252_v43 }
 0xcc3   : > { %5272 = vmatmul.mubr.msk.f32.vlgmr.msra.gmra.mxu0 %vm771_vm0, %v6259_v54 }
 0xcc4   : > { %5274 = vmatprep.mubr.msk.f32.mxu0 %vm771_vm0, %v6266_v55 }
 0xcc7   : > { %5275 = vmatmul.mubr.msk.f32.gmra.mxu0 %vm771_vm0, %v6273_v56 }
 0xcc8   : > { %5299 = vmatprep.mubr.msk.f32.mxu0 %vm921_vm7, %v6280_v11 }
 0xce2   : > { %v5265_v7 = vpop.f32.mrf.mxu1 }
 0xce4   : > { %v3130_v20 = vpop.f32.mrf.mxu1 }
 0xce6   : > { %v5268_v14 = vpop.f32.mrf.mxu1 }
 0xd7b   : > { %v5257_v23 = vpop.f32.mrf.mxu0 }
 0xd7c   : > { %v3044_v6 = vadd.f32 %v5257_v23, %v5998_v5 }
 0xd7d   : > { %v3038_v0 = vpop.f32.mrf.mxu0 }
 0xd7e   : > { %v6433_v38 = vmax.f32 %v6788_v37, %v3044_v6  ;;  %v3039_v10 = vadd.f32 %v3038_v0, %v6000_v48  ;;  %v3140_v6 = vpop.f32.mrf.mxu1 }
 0xd7f   : > { %v5260_v28 = vpop.f32.mrf.mxu0 }
 0xd80   : > { %v6439_v4 = vmax.f32 %v6789_v19, %v3039_v10  ;;  %v3054_v22 = vadd.f32 %v5260_v28, %v6773_v2 }
 0xd81   : > { %v3048_v12 = vpop.f32.mrf.mxu0 }
 0xd82   : > { %v6445_v51 = vmax.f32 %v6790_v26, %v3054_v22  ;;  %v3049_v33 = vadd.f32 %v3048_v12, %v6777_v63  ;;  %v6466_v12 = vld [vmem:[%s6732_s8] sm:$0xff] }
 0xd83   : > { %v5273_v46 = vpop.f32.mrf.mxu0 }
 0xd84   : > { %v6451_v53 = vmax.f32 %v6791_v52, %v3049_v33  ;;  %v3224_v13 = vadd.f32 %v5273_v46, %v5265_v7 }
 0xd85   : > { %v3218_v49 = vpop.f32.mrf.mxu0 }
 0xd86   : > { %v3219_v37 = vadd.f32 %v3218_v49, %v3130_v20  ;;  %v3238_v10 = vadd.f32 %v3224_v13, %v5754_v60 }
 0xd87   : > { %v5276_v42 = vpop.f32.mrf.mxu0 }
 0xd88   : > { %v3234_v23 = vadd.f32 %v5276_v42, %v5268_v14  ;;  %v3237_v1 = vadd.f32 %v3219_v37, %v5761_v15  ;;  %v3242_v22 = vmax.f32 %v3238_v10, 0.0  ;;  %v6793_v37 = vld [vmem:[#allocation8_spill] sm:$0xff]  ;;  %v6795_v10 = vld [vmem:[#allocation2_spill] sm:$0xff] }
 0xd89   : > { %v3228_v0 = vpop.f32.mrf.mxu0 }
 0xd8a   : > { %v3240_v16 = vadd.f32 %v3234_v23, %v5752_v57  ;;  %v3229_v39 = vadd.f32 %v3228_v0, %v3140_v6  ;;  %v3241_v7 = vmax.f32 %v3237_v1, 0.0 }
 0xd8c   : > { %v3244_v28 = vmax.f32 %v3240_v16, 0.0  ;;  %v3239_v19 = vadd.f32 %v3229_v39, %v5757_v9  ;;  %v6794_v16 = vld [vmem:[#allocation4_spill] sm:$0xff]  ;;  %v397_v39 = vld [vmem:[%s5641_s28 + $0x18] sm:$0xf] }
 0xd8e   : > { %v3243_v30 = vmax.f32 %v3239_v19, 0.0  ;;  %5277 = vmatprep.subr.mxu1 %v3244_v28 }
 0xd8f   : > { %5278 = vmatpush3.msra.mxu1 %v3244_v28  ;;  %v405_v28 = vsub.f32 %v397_v39, %v6795_v10 }
 0xd90   : > { %5279 = vmatprep.subr.mxu1 %v3243_v30 }
 0xd91   : > { %5280 = vmatpush3.msra.mxu1 %v3243_v30  ;;  %v450_v19 = vsel %vm407_vm3, %v405_v28, 0.0 }
 0xd92   : > { %5281 = vmatprep.subr.mxu1 %v3242_v22  ;;  %v451_v1 = vrot.slane %v450_v19, 4 }
 0xd93   : > { %5282 = vmatpush3.msra.mxu1 %v3242_v22 }
 0xd94   : > { %5283 = vmatprep.subr.mxu1 %v3241_v7  ;;  %v452_v30 = vadd.f32 %v451_v1, %v450_v19 }
 0xd95   : > { %5284 = vmatpush3.msra.mxu1 %v3241_v7 }
 0xd96   : > { %5286 = vmatmul.mubr.msk.f32.vlgmr.msra.gmra.mxu1 %vm921_vm7, %v6311_v58  ;;  %v453_v22 = vrot.slane %v452_v30, 2 }
 0xd97   : > { %5288 = vmatprep.mubr.msk.f32.mxu1 %vm921_vm7, %v6318_v62 }
 0xd98   : > { %v454_v7 = vadd.f32 %v453_v22, %v452_v30 }
 0xd9a   : > { %5289 = vmatmul.mubr.msk.f32.gmra.mxu1 %vm921_vm7, %v6325_v21 }
 0xd9b   : > { %5313 = vmatprep.mubr.msk.f32.mxu1 %vm921_vm7, %v6466_v12 }
 0xe56   : > { %v5287_v20 = vpop.f32.mrf.mxu1 }
 0xe57   : > { %v6471_v26 = vadd.f32 %v5287_v20, %v5803_v32  ;;  %v455_v20 = vrot.slane %v454_v7, 1 }
 0xe58   : > { %v3311_v33 = vpop.f32.mrf.mxu1 }
 0xe59   : > { %v6476_v52 = vadd.f32 %v3311_v33, %v5810_v34  ;;  %v456_v33 = vadd.f32 %v455_v20, %v454_v7 }
 0xe5a   : > { %v5290_v14 = vpop.f32.mrf.mxu1 }
 0xe5b   : > { %v6481_v42 = vadd.f32 %v5290_v14, %v5792_v25  ;;  %v471_v14 = vmul.f32 0.25, %v456_v33 }
 0xe5c   : > { %v3321_v13 = vpop.f32.mrf.mxu1 }
 0xe5d   : > { %v6486_v6 = vadd.f32 %v3321_v13, %v5794_v27  ;;  %5291 = vmatprep.subr.mxu0 %v6481_v42  ;;  %v479_v13 = vsub.f32 %v405_v28, %v471_v14 }
 0xe5e   : > { %5292 = vmatpush3.msra.mxu0 %v6481_v42 }
 0xe5f   : > { %6792 = vst [vmem:[#allocation9_spill] sm:$0xff] %v6486_v6  ;;  %5293 = vmatprep.subr.mxu0 %v6486_v6  ;;  %v487_v0 = vmul.f32 %v479_v13, %v479_v13 }
 0xe60   : > { %5294 = vmatpush3.msra.mxu0 %v6486_v6 }
 0xe61   : > { %5295 = vmatprep.subr.mxu0 %v6471_v26  ;;  %v531_v23 = vsel %vm407_vm3, %v487_v0, 0.0 }
 0xe62   : > { %5296 = vmatpush3.msra.mxu0 %v6471_v26  ;;  %v532_v49 = vrot.slane %v531_v23, 4 }
 0xe63   : > { %5297 = vmatprep.subr.mxu0 %v6476_v52 }
 0xe64   : > { %5298 = vmatpush3.msra.mxu0 %v6476_v52  ;;  %v533_v46 = vadd.f32 %v532_v49, %v531_v23 }
 0xe65   : > { %5300 = vmatmul.mubr.msk.f32.vlgmr.msra.gmra.mxu0 %vm921_vm7, %v6358_v61 }
 0xe66   : > { %5302 = vmatprep.mubr.msk.f32.mxu0 %vm921_vm7, %v6365_v3 }
 0xe69   : > { %5303 = vmatmul.mubr.msk.f32.gmra.mxu0 %vm921_vm7, %v6793_v37  ;;  %v534_v37 = vrot.slane %v533_v46, 2 }
 0xe6a   : > { %5321 = vmatprep.mubr.msk.f32.mxu0 %vm669_vm1, %v6794_v16 }
 0xe6b   : > { %v535_v16 = vadd.f32 %v534_v37, %v533_v46 }
 0xe6d   : > { %v536_v3 = vrot.slane %v535_v16, 1 }
 0xe6f   : > { %v537_v61 = vadd.f32 %v536_v3, %v535_v16 }
 0xe71   : > { %v551_v10 = vmul.f32 0.25, %v537_v61 }
 0xe73   : > { %5486 = vrsqrt.f32 %v551_v10  ;;  %vm597_vm8 = vcmp.eq.f32.partialorder %v551_v10, inf  ;;  %v600_v19 = vand.u32 2147483648, %v551_v10  ;;  %vm599_vm9 = vcmp.eq.f32.partialorder %v551_v10, 0.0 }
 0xe80   : > { %v5487_v6 = vpop.eup %5486 }
 0xe81   : > { %v596_v31 = vmul.f32 %v5487_v6, %v551_v10 }
 0xe83   : > { %v598_v1 = vsel %vm597_vm8, %v551_v10, %v596_v31 }
 0xe84   : > { %v601_v30 = vsel %vm599_vm9, %v600_v19, %v598_v1 }
 0xe85   : > { %v615_v22 = vadd.f32 1e-06, %v601_v30 }
 0xe87   : > { %5488 = vrcp.f32 %v615_v22 }
 0xe94   : > { %v5489_v7 = vpop.eup %5488 }
 0xe95   : > { %v631_v20 = vmul.f32 %v5489_v7, %v405_v28 }
 0xe97   : > { %5319 = vmatprep.subr.msk.mxu0 %vm682_vm6, %v631_v20 }
 0xe98   : > { %5320 = vmatpush3.msk.msra.mxu0 %vm682_vm6, %v631_v20 }
 0xe99   : > { %5322 = vmatmul.mubr.msk.f32.vlgmr.msra.gmra.mxu0 %vm669_vm1, %v6210_v17 }
 0xe9a   : > { %5324 = vmatprep.mubr.msk.f32.mxu0 %vm669_vm1, %v6217_v29 }
 0xe9d   : > { %5325 = vmatmul.mubr.msk.f32.gmra.mxu0 %vm669_vm1, %v6224_v36 }
 0xe9e   : > { %5343 = vmatprep.mubr.msk.f32.mxu0 %vm921_vm7, %v6231_v47 }
 0xf25   : > { %v5301_v31 = vpop.f32.mrf.mxu0 }
 0xf26   : > { %v3406_v23 = vadd.f32 %v5301_v31, %v5872_v40 }
 0xf27   : > { %v3400_v61 = vpop.f32.mrf.mxu0 }
 0xf28   : > { %v3401_v37 = vadd.f32 %v3400_v61, %v5876_v45  ;;  %v3420_v10 = vmax.f32 %v3406_v23, 0.0 }
 0xf29   : > { %v5304_v3 = vpop.f32.mrf.mxu0 }
 0xf2a   : > { %v3416_v46 = vadd.f32 %v5304_v3, %v5867_v18  ;;  %v3419_v28 = vmax.f32 %v3401_v37, 0.0 }
 0xf2b   : > { %v3410_v49 = vpop.f32.mrf.mxu0 }
 0xf2c   : > { %v3422_v6 = vmax.f32 %v3416_v46, 0.0  ;;  %v3411_v0 = vadd.f32 %v3410_v49, %v5869_v24 }
 0xf2e   : > { %v3421_v16 = vmax.f32 %v3411_v0, 0.0  ;;  %5305 = vmatprep.subr.mxu1 %v3422_v6 }
 0xf2f   : > { %5306 = vmatpush3.msra.mxu1 %v3422_v6 }
 0xf30   : > { %5307 = vmatprep.subr.mxu1 %v3421_v16 }
 0xf31   : > { %5308 = vmatpush3.msra.mxu1 %v3421_v16 }
 0xf32   : > { %5309 = vmatprep.subr.mxu1 %v3420_v10 }
 0xf33   : > { %5310 = vmatpush3.msra.mxu1 %v3420_v10 }
 0xf34   : > { %5311 = vmatprep.subr.mxu1 %v3419_v28 }
 0xf35   : > { %5312 = vmatpush3.msra.mxu1 %v3419_v28 }
 0xf36   : > { %5314 = vmatmul.mubr.msk.f32.vlgmr.msra.gmra.mxu1 %vm921_vm7, %v6399_v44  ;;  %5327 = vmatprep.subr.msk.mxu1 %vm784_vm2, %v397_v39 }
 0xf37   : > { %5328 = vmatpush3.msk.msra.mxu1 %vm784_vm2, %v397_v39  ;;  %5316 = vmatprep.mubr.msk.f32.mxu1 %vm921_vm7, %v6408_v8 }
 0xf3a   : > { %5317 = vmatmul.mubr.msk.f32.gmra.mxu1 %vm921_vm7, %v6415_v35 }
 0xf3b   : > { %5329 = vmatprep.mubr.msk.f32.mxu1 %vm771_vm0, %v6252_v43 }
 0xf3e   : > { %5330 = vmatmul.mubr.msk.f32.vlgmr.msra.gmra.mxu1 %vm771_vm0, %v6259_v54 }
 0xf3f   : > { %5332 = vmatprep.mubr.msk.f32.mxu1 %vm771_vm0, %v6266_v55 }
 0xf42   : > { %5333 = vmatmul.mubr.msk.f32.gmra.mxu1 %vm771_vm0, %v6273_v56 }
 0xf43   : > { %5357 = vmatprep.mubr.msk.f32.mxu1 %vm921_vm7, %v6280_v11 }
 0xf59   : > { %v5323_v13 = vpop.f32.mrf.mxu0 }
 0xf5b   : > { %v3581_v31 = vpop.f32.mrf.mxu0 }
 0xf5d   : > { %v5326_v23 = vpop.f32.mrf.mxu0 }
 0xf5f   : > { %v3591_v10 = vpop.f32.mrf.mxu0 }
 0xff6   : > { %v5315_v39 = vpop.f32.mrf.mxu1 }
 0xff7   : > { %v6543_v33 = vadd.f32 %v5315_v39, %v5998_v5 }
 0xff8   : > { %v3489_v14 = vpop.f32.mrf.mxu1 }
 0xff9   : > { %v6548_v1 = vadd.f32 %v3489_v14, %v6000_v48 }
 0xffa   : > { %v5318_v30 = vpop.f32.mrf.mxu1 }
 0xffb   : > { %v6553_v7 = vadd.f32 %v5318_v30, %v6773_v2 }
 0xffc   : > { %v3499_v20 = vpop.f32.mrf.mxu1 }
 0xffd   : > { %v6558_v3 = vadd.f32 %v3499_v20, %v6777_v63 }
 0xffe   : > { %v5331_v46 = vpop.f32.mrf.mxu1 }
 0xfff   : > { %v3675_v37 = vadd.f32 %v5331_v46, %v5323_v13 }
0x1000   : > { %v3669_v6 = vpop.f32.mrf.mxu1 }
0x1001   : > { %v3670_v39 = vadd.f32 %v3669_v6, %v3581_v31  ;;  %v3689_v61 = vadd.f32 %v3675_v37, %v5754_v60  ;;  %v6796_v31 = vmax.f32 %v6335_v50, %v6471_v26  ;;  %v6799_v26 = vld [vmem:[#allocation3_spill] sm:$0xff] }
0x1002   : > { %v5334_v0 = vpop.f32.mrf.mxu1 }
0x1003   : > { %v3685_v16 = vadd.f32 %v5334_v0, %v5326_v23  ;;  %v3688_v19 = vadd.f32 %v3670_v39, %v5761_v15  ;;  %v3693_v49 = vmax.f32 %v3689_v61, 0.0  ;;  %v6797_v23 = vmax.f32 %v6341_v59, %v6476_v52  ;;  %v6803_v59 = vld [vmem:[#allocation5_spill] sm:$0xff]  ;;  %v6805_v52 = vld [vmem:[#allocation8_spill] sm:$0xff] }
0x1004   : > { %v3679_v28 = vpop.f32.mrf.mxu1 }
0x1005   : > { %v3691_v14 = vadd.f32 %v3685_v16, %v5752_v57  ;;  %v3680_v30 = vadd.f32 %v3679_v28, %v3591_v10  ;;  %v3692_v13 = vmax.f32 %v3688_v19, 0.0  ;;  %v6798_v16 = vmax.f32 %v6347_v41, %v6481_v42  ;;  %v6800_v28 = vld [vmem:[#allocation9_spill] sm:$0xff]  ;;  %v6804_v41 = vld [vmem:[#allocation6_spill] sm:$0xff]  ;;  %v6806_v42 = vld [vmem:[#allocation4_spill] sm:$0xff] }
0x1006   : > { %v6801_v39 = vmax.f32 %v6799_v26, %v6800_v28 }
0x1007   : > { %v3695_v22 = vmax.f32 %v3691_v14, 0.0  ;;  %v3690_v20 = vadd.f32 %v3680_v30, %v5757_v9  ;;  %v398_v30 = vld [vmem:[%s5641_s28 + $0x1c] sm:$0xf] }
0x1009   : > { %v3694_v63 = vmax.f32 %v3690_v20, 0.0  ;;  %5335 = vmatprep.subr.mxu0 %v3695_v22  ;;  %v6807_v20 = vld [vmem:[#allocation2_spill] sm:$0xff] }
0x100a   : > { %5336 = vmatpush3.msra.mxu0 %v3695_v22 }
0x100b   : > { %5337 = vmatprep.subr.mxu0 %v3694_v63 }
0x100c   : > { %5338 = vmatpush3.msra.mxu0 %v3694_v63 }
0x100d   : > { %5339 = vmatprep.subr.mxu0 %v3693_v49 }
0x100e   : > { %5340 = vmatpush3.msra.mxu0 %v3693_v49 }
0x100f   : > { %5341 = vmatprep.subr.mxu0 %v3692_v13 }
0x1010   : > { %5342 = vmatpush3.msra.mxu0 %v3692_v13  ;;  %v406_v13 = vsub.f32 %v398_v30, %v6807_v20 }
0x1011   : > { %5344 = vmatmul.mubr.msk.f32.vlgmr.msra.gmra.mxu0 %vm921_vm7, %v6311_v58 }
0x1012   : > { %5346 = vmatprep.mubr.msk.f32.mxu0 %vm921_vm7, %v6318_v62 }
0x1015   : > { %5347 = vmatmul.mubr.msk.f32.gmra.mxu0 %vm921_vm7, %v6325_v21 }
0x1016   : > { %5371 = vmatprep.mubr.msk.f32.mxu0 %vm921_vm7, %v6466_v12 }
0x10d1   : > { %v5345_v22 = vpop.f32.mrf.mxu0 }
0x10d2   : > { %v3768_v63 = vadd.f32 %v5345_v22, %v5803_v32  ;;  %v457_v22 = vsel %vm407_vm3, %v406_v13, 0.0 }
0x10d3   : > { %v3762_v19 = vpop.f32.mrf.mxu0 }
0x10d4   : > { %v6578_v61 = vmax.f32 %v6796_v31, %v3768_v63  ;;  %v3763_v46 = vadd.f32 %v3762_v19, %v5810_v34 }
0x10d5   : > { %v5348_v49 = vpop.f32.mrf.mxu0 }
0x10d6   : > { %v6584_v6 = vmax.f32 %v6797_v23, %v3763_v46  ;;  %v3778_v0 = vadd.f32 %v5348_v49, %v5792_v25 }
0x10d7   : > { %v3772_v37 = vpop.f32.mrf.mxu0 }
0x10d8   : > { %v6590_v10 = vmax.f32 %v6798_v16, %v3778_v0  ;;  %v3773_v50 = vadd.f32 %v3772_v37, %v5794_v27  ;;  %5349 = vmatprep.subr.mxu1 %v3778_v0 }
0x10d9   : > { %5350 = vmatpush3.msra.mxu1 %v3778_v0 }
0x10da   : > { %v6596_v14 = vmax.f32 %v6801_v39, %v3773_v50  ;;  %5351 = vmatprep.subr.mxu1 %v3773_v50 }
0x10db   : > { %5352 = vmatpush3.msra.mxu1 %v3773_v50 }
0x10dc   : > { %6802 = vst [vmem:[#allocation3_spill] sm:$0xff] %v6596_v14  ;;  %5353 = vmatprep.subr.mxu1 %v3768_v63 }
0x10dd   : > { %5354 = vmatpush3.msra.mxu1 %v3768_v63  ;;  %v458_v63 = vrot.slane %v457_v22, 4 }
0x10de   : > { %5355 = vmatprep.subr.mxu1 %v3763_v46 }
0x10df   : > { %5356 = vmatpush3.msra.mxu1 %v3763_v46  ;;  %v459_v19 = vadd.f32 %v458_v63, %v457_v22 }
0x10e0   : > { %5358 = vmatmul.mubr.msk.f32.vlgmr.msra.gmra.mxu1 %vm921_vm7, %v6803_v59 }
0x10e1   : > { %5360 = vmatprep.mubr.msk.f32.mxu1 %vm921_vm7, %v6804_v41  ;;  %v460_v31 = vrot.slane %v459_v19, 2 }
0x10e3   : > { %v461_v46 = vadd.f32 %v460_v31, %v459_v19 }
0x10e4   : > { %5361 = vmatmul.mubr.msk.f32.gmra.mxu1 %vm921_vm7, %v6805_v52 }
0x10e5   : > { %5379 = vmatprep.mubr.msk.f32.mxu1 %vm669_vm1, %v6806_v42  ;;  %v462_v49 = vrot.slane %v461_v46, 1 }
0x10e7   : > { %v463_v23 = vadd.f32 %v462_v49, %v461_v46 }
0x10e9   : > { %v472_v0 = vmul.f32 0.25, %v463_v23 }
0x10eb   : > { %v480_v37 = vsub.f32 %v406_v13, %v472_v0 }
0x10ed   : > { %v488_v16 = vmul.f32 %v480_v37, %v480_v37 }
0x10ef   : > { %v538_v50 = vsel %vm407_vm3, %v488_v16, 0.0 }
0x10f0   : > { %v539_v26 = vrot.slane %v538_v50, 4 }
0x10f2   : > { %v540_v28 = vadd.f32 %v539_v26, %v538_v50 }
0x10f4   : > { %v541_v39 = vrot.slane %v540_v28, 2 }
0x10f6   : > { %v542_v42 = vadd.f32 %v541_v39, %v540_v28 }
0x10f8   : > { %v543_v52 = vrot.slane %v542_v42, 1 }
0x10fa   : > { %v544_v41 = vadd.f32 %v543_v52, %v542_v42 }
0x10fc   : > { %v552_v20 = vmul.f32 0.25, %v544_v41 }
0x10fe   : > { %5490 = vrsqrt.f32 %v552_v20  ;;  %vm604_vm10 = vcmp.eq.f32.partialorder %v552_v20, inf  ;;  %v607_v22 = vand.u32 2147483648, %v552_v20  ;;  %vm606_vm11 = vcmp.eq.f32.partialorder %v552_v20, 0.0 }
0x110b   : > { %v5491_v59 = vpop.eup %5490 }
0x110c   : > { %v603_v14 = vmul.f32 %v5491_v59, %v552_v20 }
0x110e   : > { %v605_v63 = vsel %vm604_vm10, %v552_v20, %v603_v14 }
0x110f   : > { %v608_v19 = vsel %vm606_vm11, %v607_v22, %v605_v63  ;;  %v6810_v22 = vmax.f32 %v6445_v51, %v6553_v7 }
0x1110   : > { %v616_v31 = vadd.f32 1e-06, %v608_v19 }
0x1112   : > { %5492 = vrcp.f32 %v616_v31  ;;  %v6812_v31 = vmax.f32 %v6451_v53, %v6558_v3 }
0x111f   : > { %v5493_v46 = vpop.eup %5492 }
0x1120   : > { %v632_v49 = vmul.f32 %v5493_v46, %v406_v13 }
0x1122   : > { %5377 = vmatprep.subr.msk.mxu1 %vm682_vm6, %v632_v49 }
0x1123   : > { %5378 = vmatpush3.msk.msra.mxu1 %vm682_vm6, %v632_v49 }
0x1124   : > { %5380 = vmatmul.mubr.msk.f32.vlgmr.msra.gmra.mxu1 %vm669_vm1, %v6210_v17 }
0x1125   : > { %5382 = vmatprep.mubr.msk.f32.mxu1 %vm669_vm1, %v6217_v29 }
0x1128   : > { %5383 = vmatmul.mubr.msk.f32.gmra.mxu1 %vm669_vm1, %v6224_v36 }
0x1129   : > { %5401 = vmatprep.mubr.msk.f32.mxu1 %vm921_vm7, %v6231_v47 }
0x11a0   : > { %v5359_v14 = vpop.f32.mrf.mxu1 }
0x11a1   : > { %v3857_v23 = vadd.f32 %v5359_v14, %v5872_v40 }
0x11a2   : > { %v3851_v59 = vpop.f32.mrf.mxu1 }
0x11a3   : > { %v3852_v37 = vadd.f32 %v3851_v59, %v5876_v45  ;;  %v3871_v36 = vmax.f32 %v3857_v23, 0.0 }
0x11a4   : > { %v5362_v41 = vpop.f32.mrf.mxu1 }
0x11a5   : > { %v3867_v52 = vadd.f32 %v5362_v41, %v5867_v18  ;;  %v3870_v47 = vmax.f32 %v3852_v37, 0.0 }
0x11a6   : > { %v3861_v13 = vpop.f32.mrf.mxu1 }
0x11a7   : > { %v3873_v0 = vmax.f32 %v3867_v52, 0.0  ;;  %v3862_v17 = vadd.f32 %v3861_v13, %v5869_v24 }
0x11a9   : > { %v3872_v29 = vmax.f32 %v3862_v17, 0.0  ;;  %5363 = vmatprep.subr.mxu0 %v3873_v0 }
0x11aa   : > { %5364 = vmatpush3.msra.mxu0 %v3873_v0 }
0x11ab   : > { %5365 = vmatprep.subr.mxu0 %v3872_v29 }
0x11ac   : > { %5366 = vmatpush3.msra.mxu0 %v3872_v29 }
0x11ad   : > { %5367 = vmatprep.subr.mxu0 %v3871_v36 }
0x11ae   : > { %5368 = vmatpush3.msra.mxu0 %v3871_v36 }
0x11af   : > { %5369 = vmatprep.subr.mxu0 %v3870_v47 }
0x11b0   : > { %5370 = vmatpush3.msra.mxu0 %v3870_v47 }
0x11b1   : > { %5372 = vmatmul.mubr.msk.f32.vlgmr.msra.gmra.mxu0 %vm921_vm7, %v6399_v44  ;;  %5385 = vmatprep.subr.msk.mxu0 %vm784_vm2, %v398_v30 }
0x11b2   : > { %5386 = vmatpush3.msk.msra.mxu0 %vm784_vm2, %v398_v30  ;;  %5374 = vmatprep.mubr.msk.f32.mxu0 %vm921_vm7, %v6408_v8 }
0x11b5   : > { %5375 = vmatmul.mubr.msk.f32.gmra.mxu0 %vm921_vm7, %v6415_v35 }
0x11b6   : > { %5387 = vmatprep.mubr.msk.f32.mxu0 %vm771_vm0, %v6252_v43  ;;  %v6808_v43 = vmax.f32 %v6433_v38, %v6543_v33  ;;  %v6811_v38 = vld [vmem:[#allocation7_spill] sm:$0xff] }
0x11b9   : > { %5388 = vmatmul.mubr.msk.f32.vlgmr.msra.gmra.mxu0 %vm771_vm0, %v6259_v54 }
0x11ba   : > { %5390 = vmatprep.mubr.msk.f32.mxu0 %vm771_vm0, %v6266_v55  ;;  %v6809_v55 = vmax.f32 %v6439_v4, %v6548_v1 }
0x11bd   : > { %5391 = vmatmul.mubr.msk.f32.gmra.mxu0 %vm771_vm0, %v6273_v56  ;;  %vm4422_vm0 = vcmask 130048  }
0x11be   : > { %5415 = vmatprep.mubr.msk.f32.mxu0 %vm921_vm7, %v6280_v11 }
0x11e4   : > { %v5381_v26 = vpop.f32.mrf.mxu1 }
0x11e6   : > { %v4032_v20 = vpop.f32.mrf.mxu1 }
0x11e8   : > { %v5384_v4 = vpop.f32.mrf.mxu1 }
0x11ea   : > { %v4042_v41 = vpop.f32.mrf.mxu1 }
0x1271   : > { %v5373_v30 = vpop.f32.mrf.mxu0 }
0x1272   : > { %v3946_v16 = vadd.f32 %v5373_v30, %v5998_v5 }
0x1273   : > { %v3940_v50 = vpop.f32.mrf.mxu0 }
0x1274   : > { %v6646_v28 = vmax.f32 %v6808_v43, %v3946_v16  ;;  %v3941_v54 = vadd.f32 %v3940_v50, %v6000_v48 }
0x1275   : > { %v5376_v39 = vpop.f32.mrf.mxu0 }
0x1276   : > { %v6652_v56 = vmax.f32 %v6809_v55, %v3941_v54  ;;  %v3956_v11 = vadd.f32 %v5376_v39, %v6773_v2 }
0x1277   : > { %v3950_v42 = vpop.f32.mrf.mxu0 }
0x1278   : > { %v6658_v63 = vmax.f32 %v6810_v22, %v3956_v11  ;;  %v3951_v33 = vadd.f32 %v3950_v42, %v6811_v38 }
0x1279   : > { %v5389_v19 = vpop.f32.mrf.mxu0 }
0x127a   : > { %v6664_v46 = vmax.f32 %v6812_v31, %v3951_v33  ;;  %v4126_v14 = vadd.f32 %v5389_v19, %v5381_v26 }
0x127b   : > { %v4120_v1 = vpop.f32.mrf.mxu0 }
0x127c   : > { %v4121_v13 = vadd.f32 %v4120_v1, %v4032_v20  ;;  %v4140_v23 = vadd.f32 %v4126_v14, %v5754_v60 }
0x127d   : > { %v5392_v49 = vpop.f32.mrf.mxu0 }
0x127e   : > { %v4136_v59 = vadd.f32 %v5392_v49, %v5384_v4  ;;  %v4139_v53 = vadd.f32 %v4121_v13, %v5761_v15  ;;  %v4144_v37 = vmax.f32 %v4140_v23, 0.0 }
0x127f   : > { %v4130_v52 = vpop.f32.mrf.mxu0 }
0x1280   : > { %v4142_v51 = vadd.f32 %v4136_v59, %v5752_v57  ;;  %v4131_v7 = vadd.f32 %v4130_v52, %v4042_v41  ;;  %v4143_v29 = vmax.f32 %v4139_v53, 0.0 }
0x1282   : > { %v4146_v0 = vmax.f32 %v4142_v51, 0.0  ;;  %v4141_v17 = vadd.f32 %v4131_v7, %v5757_v9 }
0x1284   : > { %v4145_v3 = vmax.f32 %v4141_v17, 0.0  ;;  %5393 = vmatprep.subr.mxu1 %v4146_v0 }
0x1285   : > { %5394 = vmatpush3.msra.mxu1 %v4146_v0 }
0x1286   : > { %5395 = vmatprep.subr.mxu1 %v4145_v3 }
0x1287   : > { %5396 = vmatpush3.msra.mxu1 %v4145_v3 }
0x1288   : > { %5397 = vmatprep.subr.mxu1 %v4144_v37 }
0x1289   : > { %5398 = vmatpush3.msra.mxu1 %v4144_v37 }
0x128a   : > { %5399 = vmatprep.subr.mxu1 %v4143_v29 }
0x128b   : > { %5400 = vmatpush3.msra.mxu1 %v4143_v29 }
0x128c   : > { %5402 = vmatmul.mubr.msk.f32.vlgmr.msra.gmra.mxu1 %vm921_vm7, %v6311_v58 }
0x128d   : > { %5404 = vmatprep.mubr.msk.f32.mxu1 %vm921_vm7, %v6318_v62 }
0x1290   : > { %5405 = vmatmul.mubr.msk.f32.gmra.mxu1 %vm921_vm7, %v6325_v21 }
0x1291   : > { %5429 = vmatprep.mubr.msk.f32.mxu1 %vm921_vm7, %v6466_v12  ;;  %v6813_v12 = vld [vmem:[#allocation3_spill] sm:$0xff] }
0x134c   : > { %v5403_v57 = vpop.f32.mrf.mxu1 }
0x134d   : > { %v4219_v60 = vadd.f32 %v5403_v57, %v5803_v32  ;;  %v6814_v32 = vld [vmem:[#allocation5_spill] sm:$0xff] }
0x134e   : > { %v4213_v9 = vpop.f32.mrf.mxu1 }
0x134f   : > { %v4233_v15 = vmax.f32 %v6578_v61, %v4219_v60  ;;  %v4214_v36 = vadd.f32 %v4213_v9, %v5810_v34  ;;  %v6815_v34 = vld [vmem:[#allocation6_spill] sm:$0xff] }
0x1350   : > { %v5406_v47 = vpop.f32.mrf.mxu1 }
0x1351   : > { %v4232_v58 = vmax.f32 %v6584_v6, %v4214_v36  ;;  %v4229_v30 = vadd.f32 %v5406_v47, %v5792_v25  ;;  %v6816_v25 = vld [vmem:[#allocation8_spill] sm:$0xff] }
0x1352   : > { %v4223_v62 = vpop.f32.mrf.mxu1 }
0x1353   : > { %v4235_v16 = vmax.f32 %v6590_v10, %v4229_v30  ;;  %v4224_v21 = vadd.f32 %v4223_v62, %v5794_v27  ;;  %5407 = vmatprep.subr.mxu0 %v4229_v30 }
0x1354   : > { %5408 = vmatpush3.msra.mxu0 %v4229_v30 }
0x1355   : > { %v4234_v50 = vmax.f32 %v6813_v12, %v4224_v21  ;;  %5409 = vmatprep.subr.mxu0 %v4224_v21 }
0x1356   : > { %5410 = vmatpush3.msra.mxu0 %v4224_v21 }
0x1357   : > { %5411 = vmatprep.subr.mxu0 %v4219_v60 }
0x1358   : > { %5412 = vmatpush3.msra.mxu0 %v4219_v60 }
0x1359   : > { %5413 = vmatprep.subr.mxu0 %v4214_v36 }
0x135a   : > { %5414 = vmatpush3.msra.mxu0 %v4214_v36 }
0x135b   : > { %5416 = vmatmul.mubr.msk.f32.vlgmr.msra.gmra.mxu0 %vm921_vm7, %v6814_v32 }
0x135c   : > { %5418 = vmatprep.mubr.msk.f32.mxu0 %vm921_vm7, %v6815_v34 }
0x135f   : > { %5419 = vmatmul.mubr.msk.f32.gmra.mxu0 %vm921_vm7, %v6816_v25 }
0x141b   : > { %v5417_v27 = vpop.f32.mrf.mxu0 }
0x141c   : > { %v4308_v43 = vadd.f32 %v5417_v27, %v5872_v40 }
0x141d   : > { %v4302_v61 = vpop.f32.mrf.mxu0 }
0x141e   : > { %v4303_v55 = vadd.f32 %v4302_v61, %v5876_v45  ;;  %v4322_v42 = vmax.f32 %v4308_v43, 0.0 }
0x141f   : > { %v5420_v6 = vpop.f32.mrf.mxu0 }
0x1420   : > { %v4318_v10 = vadd.f32 %v5420_v6, %v5867_v18  ;;  %v4321_v20 = vmax.f32 %v4303_v55, 0.0 }
0x1421   : > { %v4312_v26 = vpop.f32.mrf.mxu0 }
0x1422   : > { %v4324_v54 = vmax.f32 %v4318_v10, 0.0  ;;  %v4313_v39 = vadd.f32 %v4312_v26, %v5869_v24 }
0x1424   : > { %v4323_v11 = vmax.f32 %v4313_v39, 0.0  ;;  %5421 = vmatprep.subr.mxu1 %v4324_v54 }
0x1425   : > { %5422 = vmatpush3.msra.mxu1 %v4324_v54 }
0x1426   : > { %5423 = vmatprep.subr.mxu1 %v4323_v11 }
0x1427   : > { %5424 = vmatpush3.msra.mxu1 %v4323_v11 }
0x1428   : > { %5425 = vmatprep.subr.mxu1 %v4322_v42 }
0x1429   : > { %5426 = vmatpush3.msra.mxu1 %v4322_v42 }
0x142a   : > { %5427 = vmatprep.subr.mxu1 %v4321_v20 }
0x142b   : > { %5428 = vmatpush3.msra.mxu1 %v4321_v20 }
0x142c   : > { %5430 = vmatmul.mubr.msk.f32.vlgmr.msra.gmra.mxu1 %vm921_vm7, %v6399_v44 }
0x142d   : > { %5432 = vmatprep.mubr.msk.f32.mxu1 %vm921_vm7, %v6408_v8 }
0x1430   : > { %5433 = vmatmul.mubr.msk.f32.gmra.mxu1 %vm921_vm7, %v6415_v35 }
0x14ec   : > { %v5431_v18 = vpop.f32.mrf.mxu1 }
0x14ed   : > { %v4397_v24 = vadd.f32 %v5431_v18, %v5998_v5 }
0x14ee   : > { %v4391_v40 = vpop.f32.mrf.mxu1 }
0x14ef   : > { %v4411_v45 = vmax.f32 %v6646_v28, %v4397_v24  ;;  %v4392_v22 = vadd.f32 %v4391_v40, %v6000_v48 }
0x14f0   : > { %v5434_v33 = vpop.f32.mrf.mxu1 }
0x14f1   : > { %v4415_v19 = vadd.f32 %v4411_v45, %v4233_v15  ;;  %v4410_v31 = vmax.f32 %v6652_v56, %v4392_v22  ;;  %v4407_v44 = vadd.f32 %v5434_v33, %v6773_v2 }
0x14f2   : > { %v4401_v8 = vpop.f32.mrf.mxu1 }
0x14f3   : > { %v4419_v35 = vmax.f32 %v4415_v19, 0.0  ;;  %v4414_v5 = vadd.f32 %v4410_v31, %v4232_v58  ;;  %v4413_v4 = vmax.f32 %v6658_v63, %v4407_v44  ;;  %v4402_v28 = vadd.f32 %v4401_v8, %v6811_v38 }
0x14f5   : > { %4424 = vst.msk [vmem:[%s390_s20 + $0x8] sm:$0xff] %vm4422_vm0, %v4419_v35  ;;  %v4418_v48 = vmax.f32 %v4414_v5, 0.0  ;;  %v4417_v1 = vadd.f32 %v4413_v4, %v4235_v16  ;;  %v4412_v56 = vmax.f32 %v6664_v46, %v4402_v28 }
0x14f7   : > { %4423 = vst.msk [vmem:[%s390_s20] sm:$0xff] %vm4422_vm0, %v4418_v48  ;;  %v4421_v2 = vmax.f32 %v4417_v1, 0.0  ;;  %v4416_v49 = vadd.f32 %v4412_v56, %v4234_v50 }
0x14f9   : > { %4426 = vst.msk [vmem:[%s390_s20 + $0x18] sm:$0xff] %vm4422_vm0, %v4421_v2  ;;  %v4420_v14 = vmax.f32 %v4416_v49, 0.0 }
0x14fb   : > { %4425 = vst.msk [vmem:[%s390_s20 + $0x10] sm:$0xff] %vm4422_vm0, %v4420_v14 }
0x14fc PF: > { %s20_s15 = sadd.s32 1, %s5537_s15   ;;  %s6817_s13 = smov %s5533_s14 }
0x14fd   : > { %p17_p5 = scmp.ge.s32.totalorder %s20_s15, 4   ;;  %s6818_s14 = smov %s6820_s16 }
0x14ff   :  { %19 = sbr.rel (!%p17_p5) target bundleno = 2 (0x2), region = 90 }

</bundles_post_ra>
